<compile_context>
chip_gen: v6e
topology: v6e:2x2x1
jax: 0.10.0
libtpu: 0.0.40
codegen_flags: <defaults>
</compile_context>

<pallas_src>
import functools

import jax
import jax.numpy as jnp
from jax.experimental import pallas as pl
from jax.experimental.pallas import tpu as pltpu

n_qubits = 10
n_layers = 4
input_dim = 2 ** n_qubits          # 1024
n_classes = 10
meas_wire = n_qubits // 2          # PauliZ on wire 5

_HIGHEST = jax.lax.Precision.HIGHEST   # only used in the one-time offline setup


# ----------------------------------------------------------------------------
# Plain-JAX parameter setup: statevector simulation of the circuit applied to
# every basis state -> U, then A = Re(U^dag Z U).  (Runs once per weight set;
# not part of the per-batch hot path.)
# ----------------------------------------------------------------------------
def _rx(theta):
    t = jnp.asarray(theta, jnp.float32)
    c = jnp.cos(t / 2).astype(jnp.complex64)
    s = jnp.sin(t / 2).astype(jnp.complex64)
    return jnp.stack([jnp.stack([c, -1j * s]), jnp.stack([-1j * s, c])])


def _rz(theta):
    t = jnp.asarray(theta, jnp.complex64)
    em = jnp.exp(-0.5j * t)
    ep = jnp.exp(0.5j * t)
    z = jnp.zeros((), jnp.complex64)
    return jnp.stack([jnp.stack([em, z]), jnp.stack([z, ep])])


def _apply_1q(states, gate, wire):
    # PennyLane convention: wire 0 is the most-significant bit of the index.
    lead = states.shape[:-1]
    pre = 2 ** wire
    post = 2 ** (n_qubits - wire - 1)
    s = states.reshape(lead + (pre, 2, post))
    s = jnp.einsum("ab,...pbq->...paq", gate, s, precision=_HIGHEST)
    return s.reshape(lead + (input_dim,))


def _apply_cnot(states, control, target):
    idx = jnp.arange(input_dim)
    cbit = (idx >> (n_qubits - 1 - control)) & 1
    src = jnp.where(cbit == 1, idx ^ (1 << (n_qubits - 1 - target)), idx)
    return states[..., src]


def _apply_circuit(states, weights):
    for layer in range(n_layers):
        for i in range(n_qubits):
            states = _apply_1q(states, _rx(weights[layer, i, 0]), i)
            states = _apply_1q(states, _rz(weights[layer, i, 1]), i)
            states = _apply_1q(states, _rx(weights[layer, i, 2]), i)
        for i in range(0, n_qubits - 1, 2):
            states = _apply_cnot(states, i, i + 1)
        for i in range(1, n_qubits - 1, 2):
            states = _apply_cnot(states, i, i + 1)
    return states


def _pauli_z_diag():
    idx = jnp.arange(input_dim)
    bit = (idx >> (n_qubits - 1 - meas_wire)) & 1
    return (1.0 - 2.0 * bit).astype(jnp.float32)


def build_observable_matrix(weights):
    """A = Re(U^dag Z U), so that expval = psi @ A @ psi^T for real unit psi.

    Returned in bf16 (halves HBM traffic and VMEM footprint; single native
    MXU pass on all TPU generations).
    """
    basis = jnp.eye(input_dim, dtype=jnp.complex64)        # row j = |j>
    evolved = _apply_circuit(basis, weights)               # row j = U|j> => evolved = U^T
    U = evolved.T
    z = _pauli_z_diag().astype(jnp.complex64)
    M = jnp.matmul(jnp.conj(U).T, z[:, None] * U, precision=_HIGHEST)  # Hermitian
    # NOTE: on v7x, A could additionally be stored as fp8 (e4m3) for another
    # 2x saving; kept at bf16 here for portability across v5e/v6e/v7x.
    return jnp.real(M).astype(jnp.bfloat16)


# ----------------------------------------------------------------------------
# Pallas kernel: nan_to_num -> amplitude normalize -> quadratic form
# (bf16 MXU matmul + f32 reduction) -> Linear(1,10) -> log_softmax.
# Elementwise pre/post-processing stays in f32 (v5e VPU/EUP have no bf16 path);
# only the MXU operands are cast to bf16.
# ----------------------------------------------------------------------------
def quantum_classifier_kernel(x_ref, a_ref, w_ref, b_ref, o_ref):
    x = x_ref[...]                                           # (TB, D) f32
    # torch.nan_to_num(x, nan=0.0, posinf=1.0, neginf=-1.0)
    x = jnp.where(jnp.isnan(x), 0.0, x)
    x = jnp.where(x == jnp.inf, 1.0, x)
    x = jnp.where(x == -jnp.inf, -1.0, x)
    # F.normalize(p=2, dim=1) -> clip(-1,1) -> AmplitudeEmbedding(normalize=True)
    # collapses to a single normalization psi = x / ||x||: after the first L2
    # normalize every |x_i| <= 1 (so the clip is a no-op) and the second
    # normalization is either the identity or exactly x / ||x||.  All-zero rows
    # give NaN, matching the reference semantics.  rsqrt runs on the EUP slot.
    psi = x * jax.lax.rsqrt(jnp.sum(x * x, axis=1, keepdims=True))     # (TB, D)
    # expval[b] = <psi_b| U^dag Z U |psi_b> = psi_b @ A @ psi_b^T
    # Single bf16 MXU pass with f32 accumulation (well within 2e-2 tolerance).
    y = jnp.dot(psi.astype(jnp.bfloat16), a_ref[...],
                preferred_element_type=jnp.float32)          # (TB, D) f32
    expval = jnp.sum(y * psi, axis=1, keepdims=True)         # (TB, 1)
    # nn.Linear(1, 10): logits = expval * W[:, 0] + b
    logits = expval * w_ref[...] + b_ref[...]                # (TB, 10)
    # F.log_softmax(dim=1)
    m = jnp.max(logits, axis=1, keepdims=True)
    s = logits - m
    lse = jnp.log(jnp.sum(jnp.exp(s), axis=1, keepdims=True))
    o_ref[...] = s - lse


def _round_up(a, b):
    return (a + b - 1) // b * b


@functools.partial(jax.jit, static_argnames=("tb",))
def quantum_classifier_forward(x, a_mat, lin_w, lin_b, *, tb=256):
    B, D = x.shape
    # Batch tile: a multiple of 256 rows feeds the 256-wide MXU on v6e/v7x; for
    # tiny batches fall back to a single sublane-aligned (multiple-of-8) tile.
    TB = min(tb, _round_up(B, 8))
    B_pad = _round_up(B, TB)
    if B_pad != B:
        # Pad with unit basis vectors so the eps-free amplitude normalization
        # of the padded rows stays finite; they are sliced off below.
        filler = jnp.zeros((B_pad - B, D), x.dtype).at[:, 0].set(1.0)
        x = jnp.concatenate([x, filler], axis=0)
    w_row = lin_w.reshape(1, n_classes).astype(jnp.float32)   # (10,1) -> (1,10)
    b_row = lin_b.reshape(1, n_classes).astype(jnp.float32)
    out = pl.pallas_call(
        quantum_classifier_kernel,
        out_shape=jax.ShapeDtypeStruct((B_pad, n_classes), jnp.float32),
        grid=(B_pad // TB,),
        in_specs=[
            pl.BlockSpec((TB, D), lambda i: (i, 0)),
            # Constant block index: A (2 MiB bf16) is DMA'd once and stays
            # VMEM-resident across all batch tiles while x tiles are pipelined.
            pl.BlockSpec((D, D), lambda i: (0, 0)),
            pl.BlockSpec((1, n_classes), lambda i: (0, 0)),
            pl.BlockSpec((1, n_classes), lambda i: (0, 0)),
        ],
        out_specs=pl.BlockSpec((TB, n_classes), lambda i: (i, 0)),
        compiler_params=pltpu.CompilerParams(
            # Parallel batch axis -> tiles shard across both TensorCores on v7x
            # (no effect on single-TC v5e/v6e).
            dimension_semantics=("parallel",),
            # Actual need: ~2 MiB A + double-buffered x/out tiles; keep well
            # below v7x's 64 MiB physical VMEM.
            vmem_limit_bytes=24 << 20),
    )(x, a_mat, w_row, b_row)
    return out[:B]


# ----------------------------------------------------------------------------
# Pure-JAX reference (direct statevector evolution, no A matrix).
# ----------------------------------------------------------------------------
def reference_forward(x, weights, lin_w, lin_b):
    x = jnp.where(jnp.isnan(x), 0.0, x)
    x = jnp.where(x == jnp.inf, 1.0, x)
    x = jnp.where(x == -jnp.inf, -1.0, x)
    nrm = jnp.sqrt(jnp.sum(x * x, axis=1, keepdims=True))
    x = x / jnp.maximum(nrm, 1e-12)
    x = jnp.clip(x, -1.0, 1.0)
    psi = x / jnp.sqrt(jnp.sum(x * x, axis=1, keepdims=True))
    phi = _apply_circuit(psi.astype(jnp.complex64), weights)
    z = _pauli_z_diag()
    expval = jnp.real(jnp.sum(jnp.conj(phi) * (z * phi), axis=1)).astype(jnp.float32)
    logits = expval[:, None] * lin_w[None, :, 0] + lin_b[None, :]
    return jax.nn.log_softmax(logits, axis=1)


if __name__ == "__main__":
    key = jax.random.PRNGKey(0)
    k_x, k_w, k_lw, k_lb = jax.random.split(key, 4)

    B = 2
    x = jax.random.normal(k_x, (B, input_dim), jnp.float32)
    # exercise the nan_to_num path
    x = x.at[0, 0].set(jnp.nan)
    x = x.at[1, 1].set(jnp.inf)

    # TorchLayer trainable circuit weights: (n_layers, n_qubits, 3)
    weights = jax.random.normal(k_w, (n_layers, n_qubits, 3), jnp.float32)
    # nn.Linear(1, 10): weight (10, 1), bias (10,)
    lin_w = jax.random.uniform(k_lw, (n_classes, 1), jnp.float32, -1.0, 1.0)
    lin_b = jax.random.uniform(k_lb, (n_classes,), jnp.float32, -1.0, 1.0)

    a_mat = build_observable_matrix(weights)        # (1024, 1024) bf16

    out = quantum_classifier_forward(x, a_mat, lin_w, lin_b)
    out = jax.block_until_ready(out)

    ref = reference_forward(x, weights, lin_w, lin_b)
    assert out.shape == (B, n_classes)
    assert bool(jnp.allclose(out, ref, atol=2e-2, rtol=2e-2)), (out, ref)
    print("KERNEL_OK")
</pallas_src>

<mosaic_0001>
module attributes {stable_mosaic.version = 11 : i64} {
  func.func @quantum_classifier_kernel(%arg0: i32, %arg1: memref<8x1024xf32, #tpu.memory_space<vmem>>, %arg2: memref<1024x1024xbf16, #tpu.memory_space<vmem>>, %arg3: memref<1x10xf32, #tpu.memory_space<vmem>>, %arg4: memref<1x10xf32, #tpu.memory_space<vmem>>, %arg5: memref<8x10xf32, #tpu.memory_space<vmem>>) attributes {dimension_semantics = [#tpu.dimension_semantics<parallel>], iteration_bounds = array<i64: 1>, scalar_prefetch = 0 : i64, scratch_operands = 0 : i64, tpu.core_type = #tpu.core_type<tc>, window_params = [{transform_indices = @transform_0, window_bounds = array<i64: 8, 1024>}, {pipeline_mode = #tpu.pipeline_mode<synchronous>, transform_indices = @transform_1, window_bounds = array<i64: 1024, 1024>}, {pipeline_mode = #tpu.pipeline_mode<synchronous>, transform_indices = @transform_2, window_bounds = array<i64: 1, 10>}, {pipeline_mode = #tpu.pipeline_mode<synchronous>, transform_indices = @transform_3, window_bounds = array<i64: 1, 10>}, {transform_indices = @transform_4, window_bounds = array<i64: 8, 10>}]} {
    %c0 = arith.constant 0 : index
    %c0_0 = arith.constant 0 : index
    %0 = vector.load %arg1[%c0, %c0_0] : memref<8x1024xf32, #tpu.memory_space<vmem>>, vector<8x1024xf32>
    %1 = arith.cmpf one, %0, %0 : vector<8x1024xf32>
    %cst = arith.constant 0.000000e+00 : f32
    %2 = vector.broadcast %cst : f32 to vector<8x1024xf32>
    %3 = arith.select %1, %2, %0 : vector<8x1024xi1>, vector<8x1024xf32>
    %cst_1 = arith.constant 0x7F800000 : f32
    %4 = vector.broadcast %cst_1 : f32 to vector<8x1024xf32>
    %5 = arith.cmpf oeq, %3, %4 : vector<8x1024xf32>
    %cst_2 = arith.constant 1.000000e+00 : f32
    %6 = vector.broadcast %cst_2 : f32 to vector<8x1024xf32>
    %7 = arith.select %5, %6, %3 : vector<8x1024xi1>, vector<8x1024xf32>
    %cst_3 = arith.constant 0xFF800000 : f32
    %8 = vector.broadcast %cst_3 : f32 to vector<8x1024xf32>
    %9 = arith.cmpf oeq, %7, %8 : vector<8x1024xf32>
    %cst_4 = arith.constant -1.000000e+00 : f32
    %10 = vector.broadcast %cst_4 : f32 to vector<8x1024xf32>
    %11 = arith.select %9, %10, %7 : vector<8x1024xi1>, vector<8x1024xf32>
    %12 = arith.mulf %11, %11 : vector<8x1024xf32>
    %cst_5 = arith.constant dense<0.000000e+00> : vector<8xf32>
    %13 = vector.multi_reduction <add>, %12, %cst_5 [1] : vector<8x1024xf32> to vector<8xf32>
    %14 = vector.shape_cast %13 : vector<8xf32> to vector<8x1xf32>
    %15 = math.rsqrt %14 : vector<8x1xf32>
    %16 = vector.broadcast %15 : vector<8x1xf32> to vector<8x1024xf32>
    %17 = arith.mulf %11, %16 : vector<8x1024xf32>
    %18 = arith.truncf %17 : vector<8x1024xf32> to vector<8x1024xbf16>
    %c0_6 = arith.constant 0 : index
    %c0_7 = arith.constant 0 : index
    %19 = vector.load %arg2[%c0_6, %c0_7] : memref<1024x1024xbf16, #tpu.memory_space<vmem>>, vector<1024x1024xbf16>
    %cst_8 = arith.constant dense<0.000000e+00> : vector<8x1024xf32>
    %20 = tpu.matmul %18, %19, %cst_8 {dimension_numbers = #tpu.dot_dimension_numbers<[1], [0], [0], [1], [0, 0, 1, 1], [], []>} : vector<8x1024xbf16>, vector<1024x1024xbf16>, vector<8x1024xf32> -> vector<8x1024xf32>
    %21 = arith.mulf %20, %17 : vector<8x1024xf32>
    %cst_9 = arith.constant dense<0.000000e+00> : vector<8xf32>
    %22 = vector.multi_reduction <add>, %21, %cst_9 [1] : vector<8x1024xf32> to vector<8xf32>
    %23 = vector.shape_cast %22 : vector<8xf32> to vector<8x1xf32>
    %c0_10 = arith.constant 0 : index
    %c0_11 = arith.constant 0 : index
    %24 = vector.load %arg3[%c0_10, %c0_11] : memref<1x10xf32, #tpu.memory_space<vmem>>, vector<1x10xf32>
    %25 = vector.broadcast %23 : vector<8x1xf32> to vector<8x10xf32>
    %26 = vector.broadcast %24 : vector<1x10xf32> to vector<8x10xf32>
    %27 = arith.mulf %25, %26 : vector<8x10xf32>
    %c0_12 = arith.constant 0 : index
    %c0_13 = arith.constant 0 : index
    %28 = vector.load %arg4[%c0_12, %c0_13] : memref<1x10xf32, #tpu.memory_space<vmem>>, vector<1x10xf32>
    %29 = vector.broadcast %28 : vector<1x10xf32> to vector<8x10xf32>
    %30 = arith.addf %27, %29 : vector<8x10xf32>
    %cst_14 = arith.constant dense<0xFF800000> : vector<8xf32>
    %31 = vector.multi_reduction <maximumf>, %30, %cst_14 [1] : vector<8x10xf32> to vector<8xf32>
    %32 = vector.shape_cast %31 : vector<8xf32> to vector<8x1xf32>
    %33 = vector.broadcast %32 : vector<8x1xf32> to vector<8x10xf32>
    %34 = arith.subf %30, %33 : vector<8x10xf32>
    %35 = math.exp %34 : vector<8x10xf32>
    %cst_15 = arith.constant dense<0.000000e+00> : vector<8xf32>
    %36 = vector.multi_reduction <add>, %35, %cst_15 [1] : vector<8x10xf32> to vector<8xf32>
    %37 = vector.shape_cast %36 : vector<8xf32> to vector<8x1xf32>
    %38 = math.log %37 : vector<8x1xf32>
    %39 = vector.broadcast %38 : vector<8x1xf32> to vector<8x10xf32>
    %40 = arith.subf %34, %39 : vector<8x10xf32>
    %c0_16 = arith.constant 0 : index
    %c0_17 = arith.constant 0 : index
    %41 = vector.load %arg5[%c0_16, %c0_17] : memref<8x10xf32, #tpu.memory_space<vmem>>, vector<8x10xf32>
    tpu.vector_store %arg5[%c0_16, %c0_17], %40 {strides = array<i32>} : memref<8x10xf32, #tpu.memory_space<vmem>>, vector<8x10xf32>,
    return
  }
  func.func @transform_0(%arg0: i32) -> (i32, i32) {
    %c0_i32 = arith.constant 0 : i32
    %c0_i32_0 = arith.constant 0 : i32
    return %arg0, %c0_i32 : i32, i32
  }
  func.func @transform_1(%arg0: i32) -> (i32, i32) {
    %c0_i32 = arith.constant 0 : i32
    %c0_i32_0 = arith.constant 0 : i32
    %c0_i32_1 = arith.constant 0 : i32
    return %c0_i32, %c0_i32_0 : i32, i32
  }
  func.func @transform_2(%arg0: i32) -> (i32, i32) {
    %c0_i32 = arith.constant 0 : i32
    %c0_i32_0 = arith.constant 0 : i32
    %c0_i32_1 = arith.constant 0 : i32
    return %c0_i32, %c0_i32_0 : i32, i32
  }
  func.func @transform_3(%arg0: i32) -> (i32, i32) {
    %c0_i32 = arith.constant 0 : i32
    %c0_i32_0 = arith.constant 0 : i32
    %c0_i32_1 = arith.constant 0 : i32
    return %c0_i32, %c0_i32_0 : i32, i32
  }
  func.func @transform_4(%arg0: i32) -> (i32, i32) {
    %c0_i32 = arith.constant 0 : i32
    %c0_i32_0 = arith.constant 0 : i32
    return %arg0, %c0_i32 : i32, i32
  }
}

</mosaic_0001>

<bundles_post_ra>
// kernel: quantum_classifier_forward.1
= control target key start
LH: loop header
LB: loop body
LE: loop exit
PB: predicated region body
PF: predicated region fallthrough
CT: control target
= control target key end

     0   :  { %9 = vsyncpa [#allocation3], 0  ;;  %s4765_s0 = inlined_call_operand.vmem [shape: f32[8,1024], index: 0, kind: input, shape index: {}]   ;;  %s4766_s1 = inlined_call_operand.hbm [shape: bf16[1024,1024], index: 1, kind: input, shape index: {}]   ;;  %s4767_s2 = inlined_call_operand.hbm [shape: f32[1,10], index: 2, kind: input, shape index: {}]   ;;  %s4768_s3 = inlined_call_operand.hbm [shape: f32[1,10], index: 3, kind: input, shape index: {}]   ;;  %s4769_s4 = inlined_call_operand.vmem [shape: f32[8,10], index: 4, kind: output, shape index: {}]  }
   0x1   :  { %10 = vsyncpa [#allocation5], 0  ;;  %s4514_s15 = smov [#allocation4]   ;;  %s4515_s17 = smov [#allocation2]  }
   0x2   :  { %s31_s16 = sshll.u32 %s4514_s15, 4  ;;  %s18_s18 = sshll.u32 %s4515_s17, 4  ;;  %s32_s16 = int_to_ptr.vmem [resolvable:$true] %s31_s16  ;;  %s19_s18 = int_to_ptr.vmem [resolvable:$true] %s18_s18 }
   0x3   :  { %s4458_s19 = scalar_lea.vmem %s32_s16, 16  ;;  %s4462_s20 = scalar_lea.vmem %s32_s16, 32 }
   0x4   :  { %p4459_p0 = scmp.ne.s32.totalorder %s32_s16, %s4458_s19  ;;  %p4463_p1 = scmp.lt.s32.totalorder %s32_s16, %s32_s16 }
   0x5   :  { %p4464_p2 = scmp.lt.s32.totalorder %s4462_s20, %s4458_s19 }
   0x7   :  { %p4465_p3 = por %p4464_p2, %p4463_p1 }
   0x9   :  { %p4466_p4 = pnand %p4465_p3, %p4459_p0 }
   0xb   :  { %4469 = shalt.err (!%p4466_p4)
}
   0xc   :  { %34 = dma.hbm_to_vmem [thread:$0]  %s4767_s2, 16, %s32_s16, [#allocation5]  }
   0xd   :  { %s4478_s23 = scalar_lea.vmem %s19_s18, 65536  ;;  %p4483_p6 = scmp.lt.s32.totalorder %s19_s18, %s19_s18 }
   0xe   :  { %p4479_p5 = scmp.ne.s32.totalorder %s19_s18, %s4478_s23  ;;  %p4484_p7 = scmp.lt.s32.totalorder %s4478_s23, %s4478_s23 }
  0x10   :  { %p4485_p8 = por %p4484_p7, %p4483_p6 }
  0x12   :  { %p4486_p9 = pnand %p4485_p8, %p4479_p5 }
  0x14   :  { %4489 = shalt.err (!%p4486_p9)
}
  0x15   :  { %s4516_s24 = smov 512   ;;  %s4517_s25 = smov 32  }
  0x16   :  { %24 = dma.hbm_to_vmem [thread:$0]  %s4766_s1, 65536, %s19_s18, [#allocation3], %s4516_s24, %s4516_s24, %s4517_s25  }
  0x17   :  { %s4518_s28 = smov [#allocation6]  }
  0x18   :  { %s41_s29 = sshll.u32 %s4518_s28, 4  ;;  %s42_s29 = int_to_ptr.vmem [resolvable:$true] %s41_s29 }
  0x19   :  { %s4498_s30 = scalar_lea.vmem %s42_s29, 16  ;;  %s4502_s5 = scalar_lea.vmem %s42_s29, 32 }
  0x1a   :  { %p4499_p10 = scmp.ne.s32.totalorder %s42_s29, %s4498_s30  ;;  %p4503_p11 = scmp.lt.s32.totalorder %s42_s29, %s42_s29 }
  0x1b   :  { %p4504_p12 = scmp.lt.s32.totalorder %s4502_s5, %s4498_s30 }
  0x1d   :  { %p4505_p13 = por %p4504_p12, %p4503_p11 }
  0x1f   :  { %p4506_p0 = pnand %p4505_p13, %p4499_p10 }
  0x21   :  { %4509 = shalt.err (!%p4506_p0)
}
  0x22   :  { %44 = dma.hbm_to_vmem [thread:$0]  %s4768_s3, 16, %s42_s29, [#allocation5]  }
  0x23   :  { %4510 = dma.done.wait [#allocation3], 65536  }
  0x24   :  { %4511 = vsyncadd [#allocation3], 4294901760 }
  0x25   :  { %4512 = dma.done.wait [#allocation5], 32  }
  0x26   :  { %4513 = vsyncadd [#allocation5], 4294967264  ;;  %v54_v0 = vld [vmem:[%s4765_s0] sm:$0xff]  ;;  %v55_v1 = vld [vmem:[%s4765_s0 + $0x8] sm:$0xff] }
  0x27   :  { %v56_v2 = vld [vmem:[%s4765_s0 + $0x10] sm:$0xff]  ;;  %v57_v3 = vld [vmem:[%s4765_s0 + $0x18] sm:$0xff]  ;;  %v58_v4 = vld [vmem:[%s4765_s0 + $0x20] sm:$0xff]  ;;  %vm62_vm0 = vcmp.ne.f32.partialorder %v54_v0, %v54_v0  ;;  %vm63_vm1 = vcmp.ne.f32.partialorder %v55_v1, %v55_v1 }
  0x28   :  { %v59_v5 = vld [vmem:[%s4765_s0 + $0x28] sm:$0xff]  ;;  %vm64_vm2 = vcmp.ne.f32.partialorder %v56_v2, %v56_v2  ;;  %v60_v6 = vld [vmem:[%s4765_s0 + $0x30] sm:$0xff]  ;;  %v61_v7 = vld [vmem:[%s4765_s0 + $0x38] sm:$0xff]  ;;  %vm65_vm3 = vcmp.ne.f32.partialorder %v57_v3, %v57_v3  ;;  %vm66_vm4 = vcmp.ne.f32.partialorder %v58_v4, %v58_v4  ;;  %v70_v8 = vsel %vm62_vm0, 0.0, %v54_v0 }
  0x29   :  { %vm67_vm5 = vcmp.ne.f32.partialorder %v59_v5, %v59_v5  ;;  %vm68_vm6 = vcmp.ne.f32.partialorder %v60_v6, %v60_v6  ;;  %vm69_vm7 = vcmp.ne.f32.partialorder %v61_v7, %v61_v7  ;;  %v71_v9 = vsel %vm63_vm1, 0.0, %v55_v1  ;;  %v200_v27 = vld [vmem:[#allocation2 + $0x1c0] sm:$0xff] }
  0x2a   :  { %v72_v10 = vsel %vm64_vm2, 0.0, %v56_v2  ;;  %v73_v11 = vsel %vm65_vm3, 0.0, %v57_v3  ;;  %v74_v12 = vsel %vm66_vm4, 0.0, %v58_v4  ;;  %v75_v13 = vsel %vm67_vm5, 0.0, %v59_v5  ;;  %v204_v28 = vld [vmem:[#allocation2 + $0x1e0] sm:$0xff] }
  0x2b   :  { %v76_v14 = vsel %vm68_vm6, 0.0, %v60_v6  ;;  %v77_v15 = vsel %vm69_vm7, 0.0, %v61_v7  ;;  %vm78_vm8 = vcmp.eq.f32.partialorder %v70_v8, inf  ;;  %vm79_vm9 = vcmp.eq.f32.partialorder %v71_v9, inf  ;;  %v328_v30 = vld [vmem:[#allocation2 + $0x5c0] sm:$0xff] }
  0x2c   :  { %vm80_vm10 = vcmp.eq.f32.partialorder %v72_v10, inf  ;;  %vm81_vm11 = vcmp.eq.f32.partialorder %v73_v11, inf  ;;  %vm82_vm12 = vcmp.eq.f32.partialorder %v74_v12, inf  ;;  %vm83_vm13 = vcmp.eq.f32.partialorder %v75_v13, inf  ;;  %v332_v31 = vld [vmem:[#allocation2 + $0x5e0] sm:$0xff] }
  0x2d   :  { %vm84_vm14 = vcmp.eq.f32.partialorder %v76_v14, inf  ;;  %vm85_vm15 = vcmp.eq.f32.partialorder %v77_v15, inf  ;;  %v86_v16 = vsel %vm78_vm8, 1.0, %v70_v8  ;;  %v87_v17 = vsel %vm79_vm9, 1.0, %v71_v9  ;;  %v192_v32 = vld [vmem:[#allocation2 + $0x180] sm:$0xff] }
  0x2e   :  { %v88_v18 = vsel %vm80_vm10, 1.0, %v72_v10  ;;  %v89_v19 = vsel %vm81_vm11, 1.0, %v73_v11  ;;  %v90_v20 = vsel %vm82_vm12, 1.0, %v74_v12  ;;  %v91_v21 = vsel %vm83_vm13, 1.0, %v75_v13  ;;  %v196_v36 = vld [vmem:[#allocation2 + $0x1a0] sm:$0xff] }
  0x2f   :  { %vm94_vm0 = vcmp.eq.f32.partialorder %v86_v16, -inf  ;;  %vm95_vm1 = vcmp.eq.f32.partialorder %v87_v17, -inf  ;;  %vm96_vm2 = vcmp.eq.f32.partialorder %v88_v18, -inf  ;;  %v92_v22 = vsel %vm84_vm14, 1.0, %v76_v14  ;;  %v320_v37 = vld [vmem:[#allocation2 + $0x580] sm:$0xff] }
  0x30   :  { %v93_v23 = vsel %vm85_vm15, 1.0, %v77_v15  ;;  %vm97_vm3 = vcmp.eq.f32.partialorder %v89_v19, -inf  ;;  %vm98_vm4 = vcmp.eq.f32.partialorder %v90_v20, -inf  ;;  %vm99_vm5 = vcmp.eq.f32.partialorder %v91_v21, -inf  ;;  %v324_v38 = vld [vmem:[#allocation2 + $0x5a0] sm:$0xff] }
  0x31   :  { %v4577_v24 = vsel %vm94_vm0, -1.0, %v86_v16  ;;  %v4579_v25 = vsel %vm95_vm1, -1.0, %v87_v17  ;;  %v4581_v26 = vsel %vm96_vm2, -1.0, %v88_v18  ;;  %v4583_v29 = vsel %vm97_vm3, -1.0, %v89_v19  ;;  %v184_v45 = vld [vmem:[#allocation2 + $0x140] sm:$0xff] }
  0x32   :  { %v110_v33 = vmul.f32 %v4577_v24, %v4577_v24  ;;  %v111_v34 = vmul.f32 %v4579_v25, %v4579_v25  ;;  %v112_v35 = vmul.f32 %v4581_v26, %v4581_v26  ;;  %vm100_vm6 = vcmp.eq.f32.partialorder %v92_v22, -inf  ;;  %v188_v50 = vld [vmem:[#allocation2 + $0x160] sm:$0xff] }
  0x33   :  { %vm101_vm7 = vcmp.eq.f32.partialorder %v93_v23, -inf  ;;  %v4592_v39 = vsel %vm98_vm4, -1.0, %v90_v20  ;;  %v4595_v40 = vsel %vm99_vm5, -1.0, %v91_v21  ;;  %v113_v41 = vmul.f32 %v4583_v29, %v4583_v29  ;;  %v312_v51 = vld [vmem:[#allocation2 + $0x540] sm:$0xff] }
  0x34   :  { %v118_v42 = vadd.f32 %v111_v34, %v110_v33  ;;  %v3982_v43 = vcombine.high %v200_v27, %v204_v28  ;;  %v4110_v44 = vcombine.high %v328_v30, %v332_v31  ;;  %v3981_v46 = vcombine.low %v200_v27, %v204_v28  ;;  %v316_v52 = vld [vmem:[#allocation2 + $0x560] sm:$0xff] }
  0x35   :  { %v4109_v47 = vcombine.low %v328_v30, %v332_v31  ;;  %v3974_v48 = vcombine.high %v192_v32, %v196_v36  ;;  %v4102_v49 = vcombine.high %v320_v37, %v324_v38  ;;  %v114_v53 = vmul.f32 %v4592_v39, %v4592_v39  ;;  %v176_v63 = vld [vmem:[#allocation2 + $0x100] sm:$0xff] }
  0x36   :  { %v119_v54 = vadd.f32 %v118_v42, %v112_v35  ;;  %3216 = vmatprep.subr.bf16.mxu0 %v3982_v43  ;;  %3257 = vmatprep.subr.bf16.mxu1 %v4110_v44  ;;  %v4602_v55 = vsel %vm100_vm6, -1.0, %v92_v22  ;;  %v115_v56 = vmul.f32 %v4595_v40, %v4595_v40  ;;  %v3973_v57 = vcombine.low %v192_v32, %v196_v36  ;;  %v180_v0 = vld [vmem:[#allocation2 + $0x120] sm:$0xff] }
  0x37   :  { %3217 = vmatpush1.bf16.msra.mxu0 %v3981_v46  ;;  %3258 = vmatpush1.bf16.msra.mxu1 %v4109_v47  ;;  %v4101_v58 = vcombine.low %v320_v37, %v324_v38  ;;  %v4607_v59 = vsel %vm101_vm7, -1.0, %v93_v23  ;;  %v3966_v61 = vcombine.high %v184_v45, %v188_v50  ;;  %v4094_v62 = vcombine.high %v312_v51, %v316_v52  ;;  %v304_v1 = vld [vmem:[#allocation2 + $0x500] sm:$0xff] }
  0x38   :  { %v120_v60 = vadd.f32 %v119_v54, %v113_v41  ;;  %3218 = vmatprep.subr.bf16.mxu0 %v3974_v48  ;;  %3259 = vmatprep.subr.bf16.mxu1 %v4102_v49  ;;  %v308_v2 = vld [vmem:[#allocation2 + $0x520] sm:$0xff]  ;;  %v116_v3 = vmul.f32 %v4602_v55, %v4602_v55  ;;  %v117_v5 = vmul.f32 %v4607_v59, %v4607_v59  ;;  %vm3905_vm8 = vcmask 80896  }
  0x39   :  { %v3965_v6 = vcombine.low %v184_v45, %v188_v50  ;;  %v4093_v7 = vcombine.low %v312_v51, %v316_v52  ;;  %v3958_v9 = vcombine.high %v176_v63, %v180_v0  ;;  %v4086_v10 = vcombine.high %v304_v1, %v308_v2  ;;  %v168_v11 = vld [vmem:[#allocation2 + $0xc0] sm:$0xff] }
  0x3a   :  { %v121_v4 = vadd.f32 %v120_v60, %v114_v53  ;;  %v172_v12 = vld [vmem:[#allocation2 + $0xe0] sm:$0xff]  ;;  %v3957_v16 = vcombine.low %v176_v63, %v180_v0  ;;  %v4085_v17 = vcombine.low %v304_v1, %v308_v2 }
  0x3b   :  { %3219 = vmatpush1.bf16.msra.mxu0 %v3973_v57  ;;  %3260 = vmatpush1.bf16.msra.mxu1 %v4101_v58  ;;  %v296_v13 = vld [vmem:[#allocation2 + $0x4c0] sm:$0xff]  ;;  %v3950_v19 = vcombine.high %v168_v11, %v172_v12  ;;  %v3949_v28 = vcombine.low %v168_v11, %v172_v12 }
  0x3c   :  { %v122_v8 = vadd.f32 %v121_v4, %v115_v56  ;;  %3220 = vmatprep.subr.bf16.mxu0 %v3966_v61  ;;  %3261 = vmatprep.subr.bf16.mxu1 %v4094_v62  ;;  %v300_v14 = vld [vmem:[#allocation2 + $0x4e0] sm:$0xff] }
  0x3d   :  { %v4078_v20 = vcombine.high %v296_v13, %v300_v14  ;;  %v160_v21 = vld [vmem:[#allocation2 + $0x80] sm:$0xff]  ;;  %v4077_v30 = vcombine.low %v296_v13, %v300_v14 }
  0x3e   :  { %v123_v15 = vadd.f32 %v122_v8, %v116_v3  ;;  %v164_v22 = vld [vmem:[#allocation2 + $0xa0] sm:$0xff] }
  0x3f   :  { %3221 = vmatpush1.bf16.msra.mxu0 %v3965_v6  ;;  %3262 = vmatpush1.bf16.msra.mxu1 %v4093_v7  ;;  %v288_v23 = vld [vmem:[#allocation2 + $0x480] sm:$0xff]  ;;  %v3942_v31 = vcombine.high %v160_v21, %v164_v22  ;;  %v3941_v37 = vcombine.low %v160_v21, %v164_v22 }
  0x40   :  { %v124_v18 = vadd.f32 %v123_v15, %v117_v5  ;;  %3222 = vmatprep.subr.bf16.mxu0 %v3958_v9  ;;  %3263 = vmatprep.subr.bf16.mxu1 %v4086_v10  ;;  %v292_v27 = vld [vmem:[#allocation2 + $0x4a0] sm:$0xff] }
  0x41   :  { %v4070_v32 = vcombine.high %v288_v23, %v292_v27  ;;  %v152_v33 = vld [vmem:[#allocation2 + $0x40] sm:$0xff]  ;;  %v4069_v38 = vcombine.low %v288_v23, %v292_v27 }
  0x42   :  { %125 = vadd.xlane.f32.xlu0 %v124_v18  ;;  %v156_v34 = vld [vmem:[#allocation2 + $0x60] sm:$0xff] }
  0x43   :  { %3223 = vmatpush1.bf16.msra.mxu0 %v3957_v16  ;;  %3264 = vmatpush1.bf16.msra.mxu1 %v4085_v17  ;;  %v280_v35 = vld [vmem:[#allocation2 + $0x440] sm:$0xff]  ;;  %v3934_v41 = vcombine.high %v152_v33, %v156_v34  ;;  %v3933_v47 = vcombine.low %v152_v33, %v156_v34 }
  0x44   :  { %3224 = vmatprep.subr.bf16.mxu0 %v3950_v19  ;;  %3265 = vmatprep.subr.bf16.mxu1 %v4078_v20  ;;  %v284_v36 = vld [vmem:[#allocation2 + $0x460] sm:$0xff] }
  0x45   :  { %v4062_v42 = vcombine.high %v280_v35, %v284_v36  ;;  %v144_v43 = vld [vmem:[#allocation2] sm:$0xff]  ;;  %v4061_v48 = vcombine.low %v280_v35, %v284_v36 }
  0x46   :  { %v148_v44 = vld [vmem:[#allocation2 + $0x20] sm:$0xff] }
  0x47   :  { %3225 = vmatpush1.bf16.msra.mxu0 %v3949_v28  ;;  %3266 = vmatpush1.bf16.msra.mxu1 %v4077_v30  ;;  %v272_v45 = vld [vmem:[#allocation2 + $0x400] sm:$0xff]  ;;  %v3926_v49 = vcombine.high %v144_v43, %v148_v44  ;;  %v3925_v56 = vcombine.low %v144_v43, %v148_v44 }
  0x48   :  { %3226 = vmatprep.subr.bf16.mxu0 %v3942_v31  ;;  %3267 = vmatprep.subr.bf16.mxu1 %v4070_v32  ;;  %v276_v46 = vld [vmem:[#allocation2 + $0x420] sm:$0xff] }
  0x49   :  { %v4054_v50 = vcombine.high %v272_v45, %v276_v46  ;;  %v264_v51 = vld [vmem:[#allocation2 + $0x3c0] sm:$0xff]  ;;  %v4053_v57 = vcombine.low %v272_v45, %v276_v46 }
  0x4a   :  { %v268_v52 = vld [vmem:[#allocation2 + $0x3e0] sm:$0xff] }
  0x4b   :  { %3227 = vmatpush1.bf16.msra.mxu0 %v3941_v37  ;;  %3268 = vmatpush1.bf16.msra.mxu1 %v4069_v38  ;;  %v392_v53 = vld [vmem:[#allocation2 + $0x7c0] sm:$0xff]  ;;  %v4046_v58 = vcombine.high %v264_v51, %v268_v52  ;;  %v4045_v1 = vcombine.low %v264_v51, %v268_v52 }
  0x4c   :  { %3228 = vmatprep.subr.bf16.mxu0 %v3934_v41  ;;  %3269 = vmatprep.subr.bf16.mxu1 %v4062_v42  ;;  %v396_v54 = vld [vmem:[#allocation2 + $0x7e0] sm:$0xff] }
  0x4d   :  { %v4174_v60 = vcombine.high %v392_v53, %v396_v54  ;;  %v256_v61 = vld [vmem:[#allocation2 + $0x380] sm:$0xff]  ;;  %v4173_v2 = vcombine.low %v392_v53, %v396_v54 }
  0x4e   :  { %v260_v62 = vld [vmem:[#allocation2 + $0x3a0] sm:$0xff] }
  0x4f   :  { %3229 = vmatpush1.bf16.msra.mxu0 %v3933_v47  ;;  %3270 = vmatpush1.bf16.msra.mxu1 %v4061_v48  ;;  %v384_v63 = vld [vmem:[#allocation2 + $0x780] sm:$0xff]  ;;  %v4038_v3 = vcombine.high %v256_v61, %v260_v62  ;;  %v4037_v9 = vcombine.low %v256_v61, %v260_v62 }
  0x50   :  { %3230 = vmatprep.subr.bf16.mxu0 %v3926_v49  ;;  %3271 = vmatprep.subr.bf16.mxu1 %v4054_v50  ;;  %v388_v0 = vld [vmem:[#allocation2 + $0x7a0] sm:$0xff] }
  0x51   :  { %v4166_v4 = vcombine.high %v384_v63, %v388_v0  ;;  %v248_v5 = vld [vmem:[#allocation2 + $0x340] sm:$0xff]  ;;  %v4165_v10 = vcombine.low %v384_v63, %v388_v0 }
  0x52   :  { %v252_v6 = vld [vmem:[#allocation2 + $0x360] sm:$0xff] }
  0x53   :  { %3231 = vmatpush1.bf16.msra.mxu0 %v3925_v56  ;;  %3272 = vmatpush1.bf16.msra.mxu1 %v4053_v57  ;;  %v376_v7 = vld [vmem:[#allocation2 + $0x740] sm:$0xff]  ;;  %v4030_v11 = vcombine.high %v248_v5, %v252_v6  ;;  %v4029_v17 = vcombine.low %v248_v5, %v252_v6 }
  0x54   :  { %3232 = vmatprep.subr.bf16.mxu0 %v4046_v58  ;;  %3273 = vmatprep.subr.bf16.mxu1 %v4174_v60  ;;  %v380_v8 = vld [vmem:[#allocation2 + $0x760] sm:$0xff] }
  0x55   :  { %v4158_v12 = vcombine.high %v376_v7, %v380_v8  ;;  %v240_v13 = vld [vmem:[#allocation2 + $0x300] sm:$0xff]  ;;  %v4157_v18 = vcombine.low %v376_v7, %v380_v8 }
  0x56   :  { %v244_v14 = vld [vmem:[#allocation2 + $0x320] sm:$0xff] }
  0x57   :  { %3233 = vmatpush2.bf16.msra.mxu0 %v4045_v1  ;;  %3274 = vmatpush2.bf16.msra.mxu1 %v4173_v2  ;;  %v368_v15 = vld [vmem:[#allocation2 + $0x700] sm:$0xff]  ;;  %v4022_v22 = vcombine.high %v240_v13, %v244_v14  ;;  %v4021_v35 = vcombine.low %v240_v13, %v244_v14 }
  0x58   :  { %3234 = vmatprep.subr.bf16.mxu0 %v4038_v3  ;;  %3275 = vmatprep.subr.bf16.mxu1 %v4166_v4  ;;  %v372_v16 = vld [vmem:[#allocation2 + $0x720] sm:$0xff] }
  0x59   :  { %v4613_v19 = vld [vmem:[#allocation2 + $0x9c0] sm:$0xff]  ;;  %v4150_v23 = vcombine.high %v368_v15, %v372_v16  ;;  %v4149_v36 = vcombine.low %v368_v15, %v372_v16 }
  0x5a   :  { %v4615_v20 = vld [vmem:[#allocation2 + $0x9e0] sm:$0xff] }
  0x5b   :  { %3235 = vmatpush2.bf16.msra.mxu0 %v4037_v9  ;;  %3276 = vmatpush2.bf16.msra.mxu1 %v4165_v10  ;;  %v4617_v21 = vld [vmem:[#allocation2 + $0xdc0] sm:$0xff]  ;;  %v4237_v33 = vcombine.low %v4613_v19, %v4615_v20  ;;  %v4238_v5 = vcombine.high %v4613_v19, %v4615_v20 }
  0x5c   :  { %3236 = vmatprep.subr.bf16.mxu0 %v4030_v11  ;;  %3277 = vmatprep.subr.bf16.mxu1 %v4158_v12  ;;  %v232_v27 = vld [vmem:[#allocation2 + $0x2c0] sm:$0xff] }
  0x5d   :  { %v4619_v28 = vld [vmem:[#allocation2 + $0xde0] sm:$0xff] }
  0x5e   :  { %v236_v30 = vld [vmem:[#allocation2 + $0x2e0] sm:$0xff]  ;;  %v4365_v34 = vcombine.low %v4617_v21, %v4619_v28  ;;  %v4366_v6 = vcombine.high %v4617_v21, %v4619_v28 }
  0x5f   :  { %v360_v31 = vld [vmem:[#allocation2 + $0x6c0] sm:$0xff]  ;;  %3237 = vmatpush2.bf16.msra.mxu0 %v4029_v17  ;;  %3278 = vmatpush2.bf16.msra.mxu1 %v4157_v18  ;;  %v4014_v37 = vcombine.high %v232_v27, %v236_v30  ;;  %v4013_v45 = vcombine.low %v232_v27, %v236_v30 }
  0x60   :  { %v364_v32 = vld [vmem:[#allocation2 + $0x6e0] sm:$0xff]  ;;  %3238 = vmatprep.subr.bf16.mxu0 %v4022_v22  ;;  %3279 = vmatprep.subr.bf16.mxu1 %v4150_v23 }
  0x61   :  { %v4142_v38 = vcombine.high %v360_v31, %v364_v32  ;;  %v224_v41 = vld [vmem:[#allocation2 + $0x280] sm:$0xff]  ;;  %v4141_v46 = vcombine.low %v360_v31, %v364_v32 }
  0x62   :  { %v228_v42 = vld [vmem:[#allocation2 + $0x2a0] sm:$0xff] }
  0x63   :  { %v352_v43 = vld [vmem:[#allocation2 + $0x680] sm:$0xff]  ;;  %3239 = vmatpush2.bf16.msra.mxu0 %v4021_v35  ;;  %3280 = vmatpush2.bf16.msra.mxu1 %v4149_v36  ;;  %v4006_v47 = vcombine.high %v224_v41, %v228_v42  ;;  %v4005_v53 = vcombine.low %v224_v41, %v228_v42 }
  0x64   :  { %v356_v44 = vld [vmem:[#allocation2 + $0x6a0] sm:$0xff]  ;;  %3240 = vmatprep.subr.bf16.mxu0 %v4014_v37  ;;  %3281 = vmatprep.subr.bf16.mxu1 %v4142_v38 }
  0x65   :  { %v4134_v48 = vcombine.high %v352_v43, %v356_v44  ;;  %v216_v49 = vld [vmem:[#allocation2 + $0x240] sm:$0xff]  ;;  %v4133_v54 = vcombine.low %v352_v43, %v356_v44 }
  0x66   :  { %v220_v50 = vld [vmem:[#allocation2 + $0x260] sm:$0xff] }
  0x67   :  { %v344_v51 = vld [vmem:[#allocation2 + $0x640] sm:$0xff]  ;;  %3241 = vmatpush2.bf16.msra.mxu0 %v4013_v45  ;;  %3282 = vmatpush2.bf16.msra.mxu1 %v4141_v46  ;;  %v3998_v56 = vcombine.high %v216_v49, %v220_v50  ;;  %v3997_v63 = vcombine.low %v216_v49, %v220_v50 }
  0x68   :  { %v348_v52 = vld [vmem:[#allocation2 + $0x660] sm:$0xff]  ;;  %3242 = vmatprep.subr.bf16.mxu0 %v4006_v47  ;;  %3283 = vmatprep.subr.bf16.mxu1 %v4134_v48 }
  0x69   :  { %v4126_v57 = vcombine.high %v344_v51, %v348_v52  ;;  %v208_v58 = vld [vmem:[#allocation2 + $0x200] sm:$0xff]  ;;  %v4125_v0 = vcombine.low %v344_v51, %v348_v52 }
  0x6a   :  { %v212_v60 = vld [vmem:[#allocation2 + $0x220] sm:$0xff] }
  0x6b   :  { %v336_v61 = vld [vmem:[#allocation2 + $0x600] sm:$0xff]  ;;  %3243 = vmatpush2.bf16.msra.mxu0 %v4005_v53  ;;  %3284 = vmatpush2.bf16.msra.mxu1 %v4133_v54  ;;  %v3990_v1 = vcombine.high %v208_v58, %v212_v60  ;;  %v3989_v3 = vcombine.low %v208_v58, %v212_v60 }
  0x6c   :  { %v340_v62 = vld [vmem:[#allocation2 + $0x620] sm:$0xff]  ;;  %3244 = vmatprep.subr.bf16.mxu0 %v3998_v56  ;;  %3285 = vmatprep.subr.bf16.mxu1 %v4126_v57 }
  0x6d   :  { %v4118_v2 = vcombine.high %v336_v61, %v340_v62  ;;  %v4117_v4 = vcombine.low %v336_v61, %v340_v62  ;;  %v448_v13 = vld [vmem:[#allocation2 + $0x980] sm:$0xff] }
  0x6e   :  { %v452_v15 = vld [vmem:[#allocation2 + $0x9a0] sm:$0xff] }
  0x6f   :  { %3245 = vmatpush2.bf16.msra.mxu0 %v3997_v63  ;;  %3286 = vmatpush2.bf16.msra.mxu1 %v4125_v0  ;;  %v580_v16 = vld [vmem:[#allocation2 + $0xda0] sm:$0xff]  ;;  %v4230_v18 = vcombine.high %v448_v13, %v452_v15  ;;  %v4229_v35 = vcombine.low %v448_v13, %v452_v15 }
  0x70   :  { %3246 = vmatprep.subr.bf16.mxu0 %v3990_v1  ;;  %3287 = vmatprep.subr.bf16.mxu1 %v4118_v2  ;;  %v444_v23 = vld [vmem:[#allocation2 + $0x960] sm:$0xff] }
  0x71   :  { %v568_v27 = vld [vmem:[#allocation2 + $0xd40] sm:$0xff] }
  0x72   :  { %v572_v30 = vld [vmem:[#allocation2 + $0xd60] sm:$0xff] }
  0x73   :  { %3247 = vmatpush2.bf16.msra.mxu0 %v3989_v3  ;;  %3288 = vmatpush2.bf16.msra.mxu1 %v4117_v4  ;;  %v4350_v38 = vcombine.high %v568_v27, %v572_v30  ;;  %v432_v41 = vld [vmem:[#allocation2 + $0x900] sm:$0xff]  ;;  %v4349_v20 = vcombine.low %v568_v27, %v572_v30 }
  0x74   :  { %3298 = vmatprep.subr.bf16.mxu0 %v4238_v5  ;;  %3339 = vmatprep.subr.bf16.mxu1 %v4366_v6  ;;  %v436_v42 = vld [vmem:[#allocation2 + $0x920] sm:$0xff] }
  0x75   :  { %v560_v43 = vld [vmem:[#allocation2 + $0xd00] sm:$0xff]  ;;  %v4214_v21 = vcombine.high %v432_v41, %v436_v42  ;;  %v4213_v47 = vcombine.low %v432_v41, %v436_v42 }
  0x76   :  { %v564_v44 = vld [vmem:[#allocation2 + $0xd20] sm:$0xff] }
  0x77   :  { %v4342_v28 = vcombine.high %v560_v43, %v564_v44  ;;  %v552_v45 = vld [vmem:[#allocation2 + $0xcc0] sm:$0xff]  ;;  %v4341_v48 = vcombine.low %v560_v43, %v564_v44 }
  0x78   :  { %v556_v46 = vld [vmem:[#allocation2 + $0xce0] sm:$0xff] }
  0x79   :  { %v4334_v50 = vcombine.high %v552_v45, %v556_v46  ;;  %v416_v51 = vld [vmem:[#allocation2 + $0x880] sm:$0xff]  ;;  %v4333_v57 = vcombine.low %v552_v45, %v556_v46 }
  0x7a   :  { %v420_v52 = vld [vmem:[#allocation2 + $0x8a0] sm:$0xff] }
  0x7b   :  { %v544_v53 = vld [vmem:[#allocation2 + $0xc80] sm:$0xff]  ;;  %v4198_v58 = vcombine.high %v416_v51, %v420_v52  ;;  %v4197_v1 = vcombine.low %v416_v51, %v420_v52 }
  0x7c   :  { %v548_v54 = vld [vmem:[#allocation2 + $0xca0] sm:$0xff] }
  0x7d   :  { %v4326_v60 = vcombine.high %v544_v53, %v548_v54  ;;  %v408_v61 = vld [vmem:[#allocation2 + $0x840] sm:$0xff]  ;;  %v4325_v2 = vcombine.low %v544_v53, %v548_v54 }
  0x7e   :  { %v412_v62 = vld [vmem:[#allocation2 + $0x860] sm:$0xff] }
  0x7f   :  { %v536_v63 = vld [vmem:[#allocation2 + $0xc40] sm:$0xff]  ;;  %v4190_v3 = vcombine.high %v408_v61, %v412_v62  ;;  %v4189_v15 = vcombine.low %v408_v61, %v412_v62 }
  0x80   :  { %v540_v0 = vld [vmem:[#allocation2 + $0xc60] sm:$0xff] }
  0x81   :  { %v4318_v4 = vcombine.high %v536_v63, %v540_v0  ;;  %v400_v5 = vld [vmem:[#allocation2 + $0x800] sm:$0xff] }
  0x82   :  { %v404_v6 = vld [vmem:[#allocation2 + $0x820] sm:$0xff] }
  0x83   :  { %v532_v13 = vld [vmem:[#allocation2 + $0xc20] sm:$0xff]  ;;  %v4181_v30 = vcombine.low %v400_v5, %v404_v6 }
  0x84   :  { %v652_v27 = vld [vmem:[#allocation2 + $0xfe0] sm:$0xff] }
  0x85   :  { %v516_v41 = vld [vmem:[#allocation2 + $0xba0] sm:$0xff] }
  0x86   :  { %v640_v42 = vld [vmem:[#allocation2 + $0xf80] sm:$0xff] }
  0x87   :  { %v644_v43 = vld [vmem:[#allocation2 + $0xfa0] sm:$0xff] }
  0x88   :  { %v636_v45 = vld [vmem:[#allocation2 + $0xf60] sm:$0xff] }
  0x89   :  { %v500_v51 = vld [vmem:[#allocation2 + $0xb20] sm:$0xff] }
  0x8a   :  { %v624_v52 = vld [vmem:[#allocation2 + $0xf00] sm:$0xff] }
  0x8b   :  { %v628_v53 = vld [vmem:[#allocation2 + $0xf20] sm:$0xff] }
  0x8c   :  { %v492_v61 = vld [vmem:[#allocation2 + $0xae0] sm:$0xff] }
  0x8d   :  { %v616_v62 = vld [vmem:[#allocation2 + $0xec0] sm:$0xff] }
  0xcb   :  { %v126_v7 = vpop.xlane.xlu0 %125 }
  0xcc   :  { %4444 = vrsqrt.f32 %v126_v7  ;;  %v528_v7 = vld [vmem:[#allocation2 + $0xc00] sm:$0xff] }
  0xd9   :  { %v4629_v8 = vpop.eup %4444 }
  0xda   :  { %v4633_v9 = vmul.f32 %v4629_v8, %v4579_v25  ;;  %v4637_v10 = vmul.f32 %v4629_v8, %v4583_v29  ;;  %v4641_v11 = vmul.f32 %v4629_v8, %v4577_v24  ;;  %v4645_v12 = vmul.f32 %v4629_v8, %v4581_v26  ;;  %v576_v29 = vld [vmem:[#allocation2 + $0xd80] sm:$0xff] }
  0xdb   :  { %v4649_v14 = vmul.f32 %v4629_v8, %v4595_v40  ;;  %v4653_v25 = vmul.f32 %v4629_v8, %v4607_v59  ;;  %v440_v59 = vld [vmem:[#allocation2 + $0x940] sm:$0xff]  ;;  %v4358_v22 = vcombine.high %v576_v29, %v580_v16  ;;  %v4357_v36 = vcombine.low %v576_v29, %v580_v16 }
  0xdc   :  { %v4657_v24 = vpack.c.bf16 %v4633_v9, %v4633_v9  ;;  %v4661_v26 = vpack.c.bf16 %v4637_v10, %v4637_v10  ;;  %v4665_v17 = vpack.c.bf16 %v4641_v11, %v4641_v11  ;;  %v4669_v40 = vpack.c.bf16 %v4645_v12, %v4645_v12 }
  0xdd   :  { %v4677_v31 = vpack.c.bf16 %v4649_v14, %v4649_v14  ;;  %v4681_v32 = vpack.c.bf16 %v4653_v25, %v4653_v25  ;;  %v4222_v37 = vcombine.high %v440_v59, %v444_v23  ;;  %v4221_v19 = vcombine.low %v440_v59, %v444_v23  ;;  %v648_v23 = vld [vmem:[#allocation2 + $0xfc0] sm:$0xff] }
  0xde   :  { %3248 = vmatprep.mubr.bf16.mxu0 %v4657_v24  ;;  %3289 = vmatprep.mubr.bf16.mxu1 %v4661_v26  ;;  %v4317_v29 = vcombine.low %v536_v63, %v540_v0  ;;  %v4182_v16 = vcombine.high %v400_v5, %v404_v6  ;;  %v4310_v59 = vcombine.high %v528_v7, %v532_v13  ;;  %v620_v63 = vld [vmem:[#allocation2 + $0xee0] sm:$0xff] }
  0xdf   :  { %3249 = vmatmul.mubr.bf16.vlgmr.msra.gmra.mxu0 %v4665_v17  ;;  %3290 = vmatmul.mubr.bf16.vlgmr.msra.gmra.mxu1 %v4669_v40  ;;  %v484_v5 = vld [vmem:[#allocation2 + $0xaa0] sm:$0xff] }
  0xe0   :  { %3299 = vmatpush1.bf16.msra.mxu0 %v4237_v33  ;;  %3340 = vmatpush1.bf16.msra.mxu1 %v4365_v34  ;;  %v424_v33 = vld [vmem:[#allocation2 + $0x8c0] sm:$0xff] }
  0xe1   :  { %3330 = vmatprep.mubr.bf16.mxu0 %v4677_v31  ;;  %3371 = vmatprep.mubr.bf16.mxu1 %v4681_v32  ;;  %v428_v34 = vld [vmem:[#allocation2 + $0x8e0] sm:$0xff] }
  0xe2   :  { %3300 = vmatprep.subr.bf16.mxu0 %v4230_v18  ;;  %3341 = vmatprep.subr.bf16.mxu1 %v4358_v22  ;;  %v4206_v49 = vcombine.high %v424_v33, %v428_v34  ;;  %v4205_v56 = vcombine.low %v424_v33, %v428_v34  ;;  %v520_v18 = vld [vmem:[#allocation2 + $0xbc0] sm:$0xff] }
  0xe3   :  { %v524_v22 = vld [vmem:[#allocation2 + $0xbe0] sm:$0xff] }
  0xe4   :  { %3301 = vmatpush1.bf16.msra.mxu0 %v4229_v35  ;;  %3342 = vmatpush1.bf16.msra.mxu1 %v4357_v36  ;;  %v4309_v35 = vcombine.low %v528_v7, %v532_v13  ;;  %v4302_v36 = vcombine.high %v520_v18, %v524_v22  ;;  %v4301_v44 = vcombine.low %v520_v18, %v524_v22  ;;  %v508_v33 = vld [vmem:[#allocation2 + $0xb60] sm:$0xff] }
  0xe5   :  { %3302 = vmatprep.subr.bf16.mxu0 %v4222_v37  ;;  %3343 = vmatprep.subr.bf16.mxu1 %v4350_v38  ;;  %v4430_v37 = vcombine.high %v648_v23, %v652_v27  ;;  %v512_v38 = vld [vmem:[#allocation2 + $0xb80] sm:$0xff] }
  0xe6   :  { %v632_v34 = vld [vmem:[#allocation2 + $0xf40] sm:$0xff]  ;;  %v4293_v46 = vcombine.low %v512_v38, %v516_v41 }
  0xe7   :  { %v608_v6 = vld [vmem:[#allocation2 + $0xe80] sm:$0xff] }
  0xe8   :  { %3303 = vmatpush1.bf16.msra.mxu0 %v4221_v19  ;;  %3344 = vmatpush1.bf16.msra.mxu1 %v4349_v20  ;;  %v4429_v19 = vcombine.low %v648_v23, %v652_v27  ;;  %v4294_v20 = vcombine.high %v512_v38, %v516_v41  ;;  %v612_v7 = vld [vmem:[#allocation2 + $0xea0] sm:$0xff] }
  0xe9   :  { %3304 = vmatprep.subr.bf16.mxu0 %v4214_v21  ;;  %3345 = vmatprep.subr.bf16.mxu1 %v4342_v28  ;;  %v4422_v21 = vcombine.high %v640_v42, %v644_v43  ;;  %v504_v28 = vld [vmem:[#allocation2 + $0xb40] sm:$0xff] }
  0xea   :  { %v4285_v54 = vcombine.low %v504_v28, %v508_v33  ;;  %v476_v18 = vld [vmem:[#allocation2 + $0xa60] sm:$0xff] }
  0xeb   :  { %v600_v22 = vld [vmem:[#allocation2 + $0xe40] sm:$0xff] }
  0xec   :  { %3305 = vmatpush1.bf16.msra.mxu0 %v4213_v47  ;;  %3346 = vmatpush1.bf16.msra.mxu1 %v4341_v48  ;;  %v4421_v47 = vcombine.low %v640_v42, %v644_v43  ;;  %v4286_v48 = vcombine.high %v504_v28, %v508_v33  ;;  %v604_v23 = vld [vmem:[#allocation2 + $0xe60] sm:$0xff]  ;;  %v205_v28 = vld [vmem:[#allocation2 + $0x1e8] sm:$0xff] }
  0xed   :  { %3306 = vmatprep.subr.bf16.mxu0 %v4206_v49  ;;  %3347 = vmatprep.subr.bf16.mxu1 %v4334_v50  ;;  %v4414_v49 = vcombine.high %v632_v34, %v636_v45  ;;  %v496_v50 = vld [vmem:[#allocation2 + $0xb00] sm:$0xff]  ;;  %v329_v33 = vld [vmem:[#allocation2 + $0x5c8] sm:$0xff] }
  0xee   :  { %v4277_v0 = vcombine.low %v496_v50, %v500_v51  ;;  %v468_v38 = vld [vmem:[#allocation2 + $0xa20] sm:$0xff] }
  0xef   :  { %v592_v41 = vld [vmem:[#allocation2 + $0xe00] sm:$0xff] }
  0xf0   :  { %3307 = vmatpush1.bf16.msra.mxu0 %v4205_v56  ;;  %3348 = vmatpush1.bf16.msra.mxu1 %v4333_v57  ;;  %v4413_v56 = vcombine.low %v632_v34, %v636_v45  ;;  %v4278_v57 = vcombine.high %v496_v50, %v500_v51  ;;  %v596_v42 = vld [vmem:[#allocation2 + $0xe20] sm:$0xff]  ;;  %v333_v34 = vld [vmem:[#allocation2 + $0x5e8] sm:$0xff] }
  0xf1   :  { %3308 = vmatprep.subr.bf16.mxu0 %v4198_v58  ;;  %3349 = vmatprep.subr.bf16.mxu1 %v4326_v60  ;;  %v4406_v58 = vcombine.high %v624_v52, %v628_v53  ;;  %v488_v60 = vld [vmem:[#allocation2 + $0xac0] sm:$0xff]  ;;  %v4112_v50 = vcombine.high %v329_v33, %v333_v34  ;;  %v193_v51 = vld [vmem:[#allocation2 + $0x188] sm:$0xff] }
  0xf2   :  { %v4269_v13 = vcombine.low %v488_v60, %v492_v61 }
  0xf4   :  { %3309 = vmatpush1.bf16.msra.mxu0 %v4197_v1  ;;  %3350 = vmatpush1.bf16.msra.mxu1 %v4325_v2  ;;  %v4405_v1 = vcombine.low %v624_v52, %v628_v53  ;;  %v4270_v2 = vcombine.high %v488_v60, %v492_v61  ;;  %v197_v52 = vld [vmem:[#allocation2 + $0x1a8] sm:$0xff] }
  0xf5   :  { %3310 = vmatprep.subr.bf16.mxu0 %v4190_v3  ;;  %3351 = vmatprep.subr.bf16.mxu1 %v4318_v4  ;;  %v4398_v3 = vcombine.high %v616_v62, %v620_v63  ;;  %v480_v4 = vld [vmem:[#allocation2 + $0xa80] sm:$0xff]  ;;  %v321_v53 = vld [vmem:[#allocation2 + $0x588] sm:$0xff] }
  0xf6   :  { %v4261_v27 = vcombine.low %v480_v4, %v484_v5  ;;  %v185_v60 = vld [vmem:[#allocation2 + $0x148] sm:$0xff] }
  0xf7   :  { %v189_v61 = vld [vmem:[#allocation2 + $0x168] sm:$0xff] }
  0xf8   :  { %3311 = vmatpush1.bf16.msra.mxu0 %v4189_v15  ;;  %3352 = vmatpush1.bf16.msra.mxu1 %v4317_v29  ;;  %v4397_v15 = vcombine.low %v616_v62, %v620_v63  ;;  %v4262_v29 = vcombine.high %v480_v4, %v484_v5  ;;  %v313_v62 = vld [vmem:[#allocation2 + $0x548] sm:$0xff] }
  0xf9   :  { %3312 = vmatprep.subr.bf16.mxu0 %v4182_v16  ;;  %3353 = vmatprep.subr.bf16.mxu1 %v4310_v59  ;;  %v4390_v16 = vcombine.high %v608_v6, %v612_v7  ;;  %v472_v59 = vld [vmem:[#allocation2 + $0xa40] sm:$0xff]  ;;  %v317_v63 = vld [vmem:[#allocation2 + $0x568] sm:$0xff] }
  0xfa   :  { %v4253_v43 = vcombine.low %v472_v59, %v476_v18  ;;  %v177_v4 = vld [vmem:[#allocation2 + $0x108] sm:$0xff] }
  0xfb   :  { %v181_v5 = vld [vmem:[#allocation2 + $0x128] sm:$0xff] }
  0xfc   :  { %3313 = vmatpush1.bf16.msra.mxu0 %v4181_v30  ;;  %3354 = vmatpush1.bf16.msra.mxu1 %v4309_v35  ;;  %v4389_v30 = vcombine.low %v608_v6, %v612_v7  ;;  %v4254_v35 = vcombine.high %v472_v59, %v476_v18  ;;  %v305_v6 = vld [vmem:[#allocation2 + $0x508] sm:$0xff] }
  0xfd   :  { %3314 = vmatprep.subr.bf16.mxu0 %v4302_v36  ;;  %3355 = vmatprep.subr.bf16.mxu1 %v4430_v37  ;;  %v4382_v36 = vcombine.high %v600_v22, %v604_v23  ;;  %v464_v37 = vld [vmem:[#allocation2 + $0xa00] sm:$0xff]  ;;  %v309_v7 = vld [vmem:[#allocation2 + $0x528] sm:$0xff] }
  0xfe   :  { %v4245_v45 = vcombine.low %v464_v37, %v468_v38  ;;  %v169_v59 = vld [vmem:[#allocation2 + $0xc8] sm:$0xff] }
  0xff   :  { %v173_v18 = vld [vmem:[#allocation2 + $0xe8] sm:$0xff] }
 0x100   :  { %3315 = vmatpush2.bf16.msra.mxu0 %v4301_v44  ;;  %3356 = vmatpush2.bf16.msra.mxu1 %v4429_v19  ;;  %v4381_v44 = vcombine.low %v600_v22, %v604_v23  ;;  %v4246_v19 = vcombine.high %v464_v37, %v468_v38  ;;  %v297_v22 = vld [vmem:[#allocation2 + $0x4c8] sm:$0xff] }
 0x101   :  { %3316 = vmatprep.subr.bf16.mxu0 %v4294_v20  ;;  %3357 = vmatprep.subr.bf16.mxu1 %v4422_v21  ;;  %v4374_v20 = vcombine.high %v592_v41, %v596_v42  ;;  %v201_v21 = vld [vmem:[#allocation2 + $0x1c8] sm:$0xff] }
 0x102   :  { %v301_v23 = vld [vmem:[#allocation2 + $0x4e8] sm:$0xff] }
 0x103   :  { %v161_v37 = vld [vmem:[#allocation2 + $0x88] sm:$0xff] }
 0x104   :  { %3317 = vmatpush2.bf16.msra.mxu0 %v4293_v46  ;;  %3358 = vmatpush2.bf16.msra.mxu1 %v4421_v47  ;;  %v4373_v46 = vcombine.low %v592_v41, %v596_v42  ;;  %v3984_v47 = vcombine.high %v201_v21, %v205_v28  ;;  %v165_v38 = vld [vmem:[#allocation2 + $0xa8] sm:$0xff] }
 0x105   :  { %3318 = vmatprep.subr.bf16.mxu0 %v4286_v48  ;;  %3359 = vmatprep.subr.bf16.mxu1 %v4414_v49  ;;  %v4693_v48 = vmul.f32 %v4629_v8, %v4592_v39  ;;  %v4697_v49 = vmul.f32 %v4629_v8, %v4602_v55  ;;  %v3976_v55 = vcombine.high %v193_v51, %v197_v52  ;;  %v289_v41 = vld [vmem:[#allocation2 + $0x488] sm:$0xff] }
 0x106   :  { %v293_v42 = vld [vmem:[#allocation2 + $0x4a8] sm:$0xff] }
 0x107   :  { %v4705_v39 = vpack.c.bf16 %v4697_v49, %v4697_v49 }
 0x108   :  { %3319 = vmatpush2.bf16.msra.mxu0 %v4285_v54  ;;  %3360 = vmatpush2.bf16.msra.mxu1 %v4413_v56  ;;  %v325_v54 = vld [vmem:[#allocation2 + $0x5a8] sm:$0xff]  ;;  %v3983_v56 = vcombine.low %v201_v21, %v205_v28 }
 0x109   :  { %3320 = vmatprep.subr.bf16.mxu0 %v4278_v57  ;;  %3361 = vmatprep.subr.bf16.mxu1 %v4406_v58  ;;  %v4701_v57 = vpack.c.bf16 %v4693_v48, %v4693_v48  ;;  %v4111_v58 = vcombine.low %v329_v33, %v333_v34  ;;  %v4104_v8 = vcombine.high %v321_v53, %v325_v54  ;;  %v153_v21 = vld [vmem:[#allocation2 + $0x48] sm:$0xff] }
 0x10a   :  { %v157_v28 = vld [vmem:[#allocation2 + $0x68] sm:$0xff] }
 0x10b   :  { %v281_v33 = vld [vmem:[#allocation2 + $0x448] sm:$0xff] }
 0x10c   :  { %3321 = vmatpush2.bf16.msra.mxu0 %v4277_v0  ;;  %3362 = vmatpush2.bf16.msra.mxu1 %v4405_v1  ;;  %v3975_v0 = vcombine.low %v193_v51, %v197_v52  ;;  %v4103_v1 = vcombine.low %v321_v53, %v325_v54  ;;  %v285_v34 = vld [vmem:[#allocation2 + $0x468] sm:$0xff] }
 0x10d   :  { %3322 = vmatprep.subr.bf16.mxu0 %v4270_v2  ;;  %3363 = vmatprep.subr.bf16.mxu1 %v4398_v3  ;;  %v3968_v2 = vcombine.high %v185_v60, %v189_v61  ;;  %v4096_v3 = vcombine.high %v313_v62, %v317_v63  ;;  %v145_v51 = vld [vmem:[#allocation2 + $0x8] sm:$0xff] }
 0x10e   :  { %v149_v52 = vld [vmem:[#allocation2 + $0x28] sm:$0xff] }
 0x10f   :  { %v273_v53 = vld [vmem:[#allocation2 + $0x408] sm:$0xff] }
 0x110   :  { %3323 = vmatpush2.bf16.msra.mxu0 %v4269_v13  ;;  %3364 = vmatpush2.bf16.msra.mxu1 %v4397_v15  ;;  %v3967_v13 = vcombine.low %v185_v60, %v189_v61  ;;  %v4095_v15 = vcombine.low %v313_v62, %v317_v63  ;;  %v277_v54 = vld [vmem:[#allocation2 + $0x428] sm:$0xff] }
 0x111   :  { %3324 = vmatprep.subr.bf16.mxu0 %v4262_v29  ;;  %3365 = vmatprep.subr.bf16.mxu1 %v4390_v16  ;;  %v3960_v29 = vcombine.high %v177_v4, %v181_v5  ;;  %v4088_v16 = vcombine.high %v305_v6, %v309_v7  ;;  %v265_v60 = vld [vmem:[#allocation2 + $0x3c8] sm:$0xff] }
 0x112   :  { %v269_v61 = vld [vmem:[#allocation2 + $0x3e8] sm:$0xff] }
 0x113   :  { %v393_v62 = vld [vmem:[#allocation2 + $0x7c8] sm:$0xff] }
 0x114   :  { %3325 = vmatpush2.bf16.msra.mxu0 %v4261_v27  ;;  %3366 = vmatpush2.bf16.msra.mxu1 %v4389_v30  ;;  %v3959_v27 = vcombine.low %v177_v4, %v181_v5  ;;  %v4087_v30 = vcombine.low %v305_v6, %v309_v7  ;;  %v397_v63 = vld [vmem:[#allocation2 + $0x7e8] sm:$0xff] }
 0x115   :  { %3326 = vmatprep.subr.bf16.mxu0 %v4254_v35  ;;  %3367 = vmatprep.subr.bf16.mxu1 %v4382_v36  ;;  %v3952_v35 = vcombine.high %v169_v59, %v173_v18  ;;  %v4080_v36 = vcombine.high %v297_v22, %v301_v23  ;;  %v257_v4 = vld [vmem:[#allocation2 + $0x388] sm:$0xff] }
 0x116   :  { %v261_v5 = vld [vmem:[#allocation2 + $0x3a8] sm:$0xff] }
 0x117   :  { %v385_v6 = vld [vmem:[#allocation2 + $0x788] sm:$0xff] }
 0x118   :  { %3327 = vmatpush2.bf16.msra.mxu0 %v4253_v43  ;;  %3368 = vmatpush2.bf16.msra.mxu1 %v4381_v44  ;;  %v3951_v43 = vcombine.low %v169_v59, %v173_v18  ;;  %v4079_v44 = vcombine.low %v297_v22, %v301_v23  ;;  %v389_v7 = vld [vmem:[#allocation2 + $0x7a8] sm:$0xff] }
 0x119   :  { %3328 = vmatprep.subr.bf16.mxu0 %v4246_v19  ;;  %3369 = vmatprep.subr.bf16.mxu1 %v4374_v20  ;;  %v3944_v19 = vcombine.high %v161_v37, %v165_v38  ;;  %v4072_v20 = vcombine.high %v289_v41, %v293_v42  ;;  %v249_v59 = vld [vmem:[#allocation2 + $0x348] sm:$0xff] }
 0x11a   :  { %v253_v18 = vld [vmem:[#allocation2 + $0x368] sm:$0xff] }
 0x11b   :  { %v377_v22 = vld [vmem:[#allocation2 + $0x748] sm:$0xff] }
 0x11c   :  { %3329 = vmatpush2.bf16.msra.mxu0 %v4245_v45  ;;  %3370 = vmatpush2.bf16.msra.mxu1 %v4373_v46  ;;  %v3943_v45 = vcombine.low %v161_v37, %v165_v38  ;;  %v4071_v46 = vcombine.low %v289_v41, %v293_v42  ;;  %v381_v23 = vld [vmem:[#allocation2 + $0x768] sm:$0xff] }
 0x11d   :  { %3380 = vmatprep.subr.bf16.mxu0 %v3984_v47  ;;  %3421 = vmatprep.subr.bf16.mxu1 %v4112_v50  ;;  %v3936_v47 = vcombine.high %v153_v21, %v157_v28  ;;  %v4064_v50 = vcombine.high %v281_v33, %v285_v34  ;;  %v241_v37 = vld [vmem:[#allocation2 + $0x308] sm:$0xff] }
 0x11e   :  { %v245_v38 = vld [vmem:[#allocation2 + $0x328] sm:$0xff] }
 0x11f   :  { %3331 = vmatmul.mubr.bf16.vlgmr.msra.gmra.mxu0 %v4701_v57  ;;  %3372 = vmatmul.mubr.bf16.vlgmr.msra.gmra.mxu1 %v4705_v39  ;;  %v369_v41 = vld [vmem:[#allocation2 + $0x708] sm:$0xff] }
 0x120   :  { %3381 = vmatpush1.bf16.msra.mxu0 %v3983_v56  ;;  %3412 = vmatprep.mubr.bf16.mxu0 %v4657_v24  ;;  %v3935_v56 = vcombine.low %v153_v21, %v157_v28  ;;  %v373_v42 = vld [vmem:[#allocation2 + $0x728] sm:$0xff] }
 0x121   :  { %3422 = vmatpush1.bf16.msra.mxu1 %v4111_v58  ;;  %3453 = vmatprep.mubr.bf16.mxu1 %v4661_v26  ;;  %v4063_v58 = vcombine.low %v281_v33, %v285_v34  ;;  %v233_v21 = vld [vmem:[#allocation2 + $0x2c8] sm:$0xff] }
 0x122   :  { %3382 = vmatprep.subr.bf16.mxu0 %v3976_v55  ;;  %3423 = vmatprep.subr.bf16.mxu1 %v4104_v8  ;;  %v3928_v55 = vcombine.high %v145_v51, %v149_v52  ;;  %v4056_v8 = vcombine.high %v273_v53, %v277_v54  ;;  %v237_v28 = vld [vmem:[#allocation2 + $0x2e8] sm:$0xff] }
 0x123   :  { %v361_v33 = vld [vmem:[#allocation2 + $0x6c8] sm:$0xff] }
 0x124   :  { %3383 = vmatpush1.bf16.msra.mxu0 %v3975_v0  ;;  %v3927_v0 = vcombine.low %v145_v51, %v149_v52  ;;  %v365_v34 = vld [vmem:[#allocation2 + $0x6e8] sm:$0xff] }
 0x125   :  { %3424 = vmatpush1.bf16.msra.mxu1 %v4103_v1  ;;  %3384 = vmatprep.subr.bf16.mxu0 %v3968_v2  ;;  %v4055_v1 = vcombine.low %v273_v53, %v277_v54  ;;  %v4048_v2 = vcombine.high %v265_v60, %v269_v61  ;;  %v225_v51 = vld [vmem:[#allocation2 + $0x288] sm:$0xff] }
 0x126   :  { %3425 = vmatprep.subr.bf16.mxu1 %v4096_v3  ;;  %v4176_v3 = vcombine.high %v393_v62, %v397_v63  ;;  %v229_v52 = vld [vmem:[#allocation2 + $0x2a8] sm:$0xff] }
 0x127   :  { %v353_v53 = vld [vmem:[#allocation2 + $0x688] sm:$0xff] }
 0x128   :  { %3385 = vmatpush1.bf16.msra.mxu0 %v3967_v13  ;;  %v4047_v13 = vcombine.low %v265_v60, %v269_v61  ;;  %v357_v54 = vld [vmem:[#allocation2 + $0x6a8] sm:$0xff] }
 0x129   :  { %3426 = vmatpush1.bf16.msra.mxu1 %v4095_v15  ;;  %3386 = vmatprep.subr.bf16.mxu0 %v3960_v29  ;;  %v4175_v15 = vcombine.low %v393_v62, %v397_v63  ;;  %v4040_v29 = vcombine.high %v257_v4, %v261_v5  ;;  %v217_v60 = vld [vmem:[#allocation2 + $0x248] sm:$0xff] }
 0x12a   :  { %3427 = vmatprep.subr.bf16.mxu1 %v4088_v16  ;;  %v4168_v16 = vcombine.high %v385_v6, %v389_v7  ;;  %v221_v61 = vld [vmem:[#allocation2 + $0x268] sm:$0xff] }
 0x12b   :  { %v345_v62 = vld [vmem:[#allocation2 + $0x648] sm:$0xff] }
 0x12c   :  { %3387 = vmatpush1.bf16.msra.mxu0 %v3959_v27  ;;  %v4039_v27 = vcombine.low %v257_v4, %v261_v5  ;;  %v349_v63 = vld [vmem:[#allocation2 + $0x668] sm:$0xff] }
 0x12d   :  { %3428 = vmatpush1.bf16.msra.mxu1 %v4087_v30  ;;  %3388 = vmatprep.subr.bf16.mxu0 %v3952_v35  ;;  %v4167_v30 = vcombine.low %v385_v6, %v389_v7  ;;  %v4032_v35 = vcombine.high %v249_v59, %v253_v18  ;;  %v209_v4 = vld [vmem:[#allocation2 + $0x208] sm:$0xff] }
 0x12e   :  { %3429 = vmatprep.subr.bf16.mxu1 %v4080_v36  ;;  %v4160_v36 = vcombine.high %v377_v22, %v381_v23  ;;  %v213_v5 = vld [vmem:[#allocation2 + $0x228] sm:$0xff] }
 0x12f   :  { %v337_v6 = vld [vmem:[#allocation2 + $0x608] sm:$0xff] }
 0x130   :  { %3389 = vmatpush1.bf16.msra.mxu0 %v3951_v43  ;;  %v4031_v43 = vcombine.low %v249_v59, %v253_v18  ;;  %v341_v7 = vld [vmem:[#allocation2 + $0x628] sm:$0xff] }
 0x131   :  { %3430 = vmatpush1.bf16.msra.mxu1 %v4079_v44  ;;  %3390 = vmatprep.subr.bf16.mxu0 %v3944_v19  ;;  %v4159_v44 = vcombine.low %v377_v22, %v381_v23  ;;  %v4024_v19 = vcombine.high %v241_v37, %v245_v38  ;;  %v457_v59 = vld [vmem:[#allocation2 + $0x9c8] sm:$0xff] }
 0x132   :  { %3431 = vmatprep.subr.bf16.mxu1 %v4072_v20  ;;  %v4152_v20 = vcombine.high %v369_v41, %v373_v42  ;;  %v461_v18 = vld [vmem:[#allocation2 + $0x9e8] sm:$0xff] }
 0x133   :  { %v585_v22 = vld [vmem:[#allocation2 + $0xdc8] sm:$0xff] }
 0x134   :  { %3391 = vmatpush1.bf16.msra.mxu0 %v3943_v45  ;;  %v4023_v45 = vcombine.low %v241_v37, %v245_v38  ;;  %v589_v23 = vld [vmem:[#allocation2 + $0xde8] sm:$0xff] }
 0x135   :  { %3432 = vmatpush1.bf16.msra.mxu1 %v4071_v46  ;;  %3392 = vmatprep.subr.bf16.mxu0 %v3936_v47  ;;  %v4151_v46 = vcombine.low %v369_v41, %v373_v42  ;;  %v4016_v47 = vcombine.high %v233_v21, %v237_v28  ;;  %v449_v37 = vld [vmem:[#allocation2 + $0x988] sm:$0xff]  ;;  %v4239_v41 = vcombine.low %v457_v59, %v461_v18 }
 0x136   :  { %3433 = vmatprep.subr.bf16.mxu1 %v4064_v50  ;;  %v4144_v50 = vcombine.high %v361_v33, %v365_v34  ;;  %v453_v38 = vld [vmem:[#allocation2 + $0x9a8] sm:$0xff] }
 0x137   :  { %v577_v42 = vld [vmem:[#allocation2 + $0xd88] sm:$0xff] }
 0x138   :  { %3393 = vmatpush1.bf16.msra.mxu0 %v3935_v56  ;;  %v4015_v56 = vcombine.low %v233_v21, %v237_v28  ;;  %v445_v21 = vld [vmem:[#allocation2 + $0x968] sm:$0xff] }
 0x139   :  { %3434 = vmatpush1.bf16.msra.mxu1 %v4063_v58  ;;  %3394 = vmatprep.subr.bf16.mxu0 %v3928_v55  ;;  %v4143_v58 = vcombine.low %v361_v33, %v365_v34  ;;  %v4008_v55 = vcombine.high %v225_v51, %v229_v52  ;;  %v569_v33 = vld [vmem:[#allocation2 + $0xd48] sm:$0xff] }
 0x13a   :  { %3435 = vmatprep.subr.bf16.mxu1 %v4056_v8  ;;  %v4136_v8 = vcombine.high %v353_v53, %v357_v54  ;;  %v573_v34 = vld [vmem:[#allocation2 + $0xd68] sm:$0xff] }
 0x13c   :  { %3395 = vmatpush1.bf16.msra.mxu0 %v3927_v0  ;;  %v4007_v0 = vcombine.low %v225_v51, %v229_v52  ;;  %v433_v51 = vld [vmem:[#allocation2 + $0x908] sm:$0xff] }
 0x13d   :  { %3436 = vmatpush1.bf16.msra.mxu1 %v4055_v1  ;;  %3396 = vmatprep.subr.bf16.mxu0 %v4048_v2  ;;  %v4135_v1 = vcombine.low %v353_v53, %v357_v54  ;;  %v4000_v2 = vcombine.high %v217_v60, %v221_v61  ;;  %v437_v52 = vld [vmem:[#allocation2 + $0x928] sm:$0xff] }
 0x13e   :  { %3437 = vmatprep.subr.bf16.mxu1 %v4176_v3  ;;  %v4128_v3 = vcombine.high %v345_v62, %v349_v63  ;;  %v561_v53 = vld [vmem:[#allocation2 + $0xd08] sm:$0xff] }
 0x13f   :  { %v565_v54 = vld [vmem:[#allocation2 + $0xd28] sm:$0xff] }
 0x140   :  { %3397 = vmatpush2.bf16.msra.mxu0 %v4047_v13  ;;  %v3999_v13 = vcombine.low %v217_v60, %v221_v61  ;;  %v425_v60 = vld [vmem:[#allocation2 + $0x8c8] sm:$0xff] }
 0x141   :  { %3438 = vmatpush2.bf16.msra.mxu1 %v4175_v15  ;;  %3398 = vmatprep.subr.bf16.mxu0 %v4040_v29  ;;  %v4127_v15 = vcombine.low %v345_v62, %v349_v63  ;;  %v3992_v29 = vcombine.high %v209_v4, %v213_v5  ;;  %v429_v61 = vld [vmem:[#allocation2 + $0x8e8] sm:$0xff] }
 0x142   :  { %3439 = vmatprep.subr.bf16.mxu1 %v4168_v16  ;;  %v4120_v16 = vcombine.high %v337_v6, %v341_v7  ;;  %v553_v62 = vld [vmem:[#allocation2 + $0xcc8] sm:$0xff] }
 0x143   :  { %v557_v63 = vld [vmem:[#allocation2 + $0xce8] sm:$0xff] }
 0x144   :  { %3399 = vmatpush2.bf16.msra.mxu0 %v4039_v27  ;;  %v3991_v27 = vcombine.low %v209_v4, %v213_v5  ;;  %v417_v4 = vld [vmem:[#allocation2 + $0x888] sm:$0xff] }
 0x145   :  { %3440 = vmatpush2.bf16.msra.mxu1 %v4167_v30  ;;  %3400 = vmatprep.subr.bf16.mxu0 %v4032_v35  ;;  %v4119_v30 = vcombine.low %v337_v6, %v341_v7  ;;  %v4240_v35 = vcombine.high %v457_v59, %v461_v18  ;;  %v421_v5 = vld [vmem:[#allocation2 + $0x8a8] sm:$0xff] }
 0x146   :  { %3441 = vmatprep.subr.bf16.mxu1 %v4160_v36  ;;  %v4368_v36 = vcombine.high %v585_v22, %v589_v23  ;;  %v545_v6 = vld [vmem:[#allocation2 + $0xc88] sm:$0xff] }
 0x147   :  { %v549_v7 = vld [vmem:[#allocation2 + $0xca8] sm:$0xff] }
 0x148   :  { %3401 = vmatpush2.bf16.msra.mxu0 %v4031_v43  ;;  %v581_v43 = vld [vmem:[#allocation2 + $0xda8] sm:$0xff] }
 0x149   :  { %3442 = vmatpush2.bf16.msra.mxu1 %v4159_v44  ;;  %3402 = vmatprep.subr.bf16.mxu0 %v4024_v19  ;;  %v4367_v44 = vcombine.low %v585_v22, %v589_v23  ;;  %v4232_v19 = vcombine.high %v449_v37, %v453_v38  ;;  %v4360_v28 = vcombine.high %v577_v42, %v581_v43  ;;  %v409_v59 = vld [vmem:[#allocation2 + $0x848] sm:$0xff] }
 0x14a   :  { %3443 = vmatprep.subr.bf16.mxu1 %v4152_v20  ;;  %v441_v20 = vld [vmem:[#allocation2 + $0x948] sm:$0xff] }
 0x14b   :  { %v413_v18 = vld [vmem:[#allocation2 + $0x868] sm:$0xff] }
 0x14c   :  { %3403 = vmatpush2.bf16.msra.mxu0 %v4023_v45  ;;  %v4231_v45 = vcombine.low %v449_v37, %v453_v38  ;;  %v537_v22 = vld [vmem:[#allocation2 + $0xc48] sm:$0xff] }
 0x14d   :  { %3444 = vmatpush2.bf16.msra.mxu1 %v4151_v46  ;;  %3404 = vmatprep.subr.bf16.mxu0 %v4016_v47  ;;  %v4359_v46 = vcombine.low %v577_v42, %v581_v43  ;;  %v4224_v47 = vcombine.high %v441_v20, %v445_v21  ;;  %v541_v23 = vld [vmem:[#allocation2 + $0xc68] sm:$0xff]  ;;  %v4191_v43 = vcombine.low %v409_v59, %v413_v18 }
 0x14e   :  { %3445 = vmatprep.subr.bf16.mxu1 %v4144_v50  ;;  %v4352_v50 = vcombine.high %v569_v33, %v573_v34  ;;  %v401_v37 = vld [vmem:[#allocation2 + $0x808] sm:$0xff] }
 0x14f   :  { %v405_v38 = vld [vmem:[#allocation2 + $0x828] sm:$0xff] }
 0x150   :  { %3405 = vmatpush2.bf16.msra.mxu0 %v4015_v56  ;;  %v4223_v56 = vcombine.low %v441_v20, %v445_v21  ;;  %v533_v42 = vld [vmem:[#allocation2 + $0xc28] sm:$0xff] }
 0x151   :  { %3446 = vmatpush2.bf16.msra.mxu1 %v4143_v58  ;;  %3406 = vmatprep.subr.bf16.mxu0 %v4008_v55  ;;  %v4351_v58 = vcombine.low %v569_v33, %v573_v34  ;;  %v4216_v55 = vcombine.high %v433_v51, %v437_v52  ;;  %v521_v21 = vld [vmem:[#allocation2 + $0xbc8] sm:$0xff] }
 0x152   :  { %3447 = vmatprep.subr.bf16.mxu1 %v4136_v8  ;;  %v4344_v8 = vcombine.high %v561_v53, %v565_v54  ;;  %v649_v33 = vld [vmem:[#allocation2 + $0xfc8] sm:$0xff] }
 0x153   :  { %v653_v34 = vld [vmem:[#allocation2 + $0xfe8] sm:$0xff] }
 0x154   :  { %3407 = vmatpush2.bf16.msra.mxu0 %v4007_v0  ;;  %v4215_v0 = vcombine.low %v433_v51, %v437_v52  ;;  %v513_v51 = vld [vmem:[#allocation2 + $0xb88] sm:$0xff] }
 0x155   :  { %3448 = vmatpush2.bf16.msra.mxu1 %v4135_v1  ;;  %3408 = vmatprep.subr.bf16.mxu0 %v4000_v2  ;;  %v4343_v1 = vcombine.low %v561_v53, %v565_v54  ;;  %v4208_v2 = vcombine.high %v425_v60, %v429_v61  ;;  %v517_v52 = vld [vmem:[#allocation2 + $0xba8] sm:$0xff] }
 0x156   :  { %3449 = vmatprep.subr.bf16.mxu1 %v4128_v3  ;;  %v4336_v3 = vcombine.high %v553_v62, %v557_v63  ;;  %v641_v53 = vld [vmem:[#allocation2 + $0xf88] sm:$0xff] }
 0x157   :  { %v645_v54 = vld [vmem:[#allocation2 + $0xfa8] sm:$0xff] }
 0x158   :  { %3409 = vmatpush2.bf16.msra.mxu0 %v3999_v13  ;;  %v4207_v13 = vcombine.low %v425_v60, %v429_v61  ;;  %v505_v60 = vld [vmem:[#allocation2 + $0xb48] sm:$0xff] }
 0x159   :  { %3450 = vmatpush2.bf16.msra.mxu1 %v4127_v15  ;;  %3410 = vmatprep.subr.bf16.mxu0 %v3992_v29  ;;  %v4335_v15 = vcombine.low %v553_v62, %v557_v63  ;;  %v4200_v29 = vcombine.high %v417_v4, %v421_v5  ;;  %v509_v61 = vld [vmem:[#allocation2 + $0xb68] sm:$0xff] }
 0x15a   :  { %3451 = vmatprep.subr.bf16.mxu1 %v4120_v16  ;;  %v4328_v16 = vcombine.high %v545_v6, %v549_v7  ;;  %v633_v62 = vld [vmem:[#allocation2 + $0xf48] sm:$0xff] }
 0x15b   :  { %v637_v63 = vld [vmem:[#allocation2 + $0xf68] sm:$0xff] }
 0x15c   :  { %3411 = vmatpush2.bf16.msra.mxu0 %v3991_v27  ;;  %v4199_v27 = vcombine.low %v417_v4, %v421_v5  ;;  %v497_v4 = vld [vmem:[#allocation2 + $0xb08] sm:$0xff] }
 0x15d   :  { %3452 = vmatpush2.bf16.msra.mxu1 %v4119_v30  ;;  %3462 = vmatprep.subr.bf16.mxu0 %v4240_v35  ;;  %v4327_v30 = vcombine.low %v545_v6, %v549_v7  ;;  %v4192_v35 = vcombine.high %v409_v59, %v413_v18  ;;  %v501_v5 = vld [vmem:[#allocation2 + $0xb28] sm:$0xff] }
 0x15e   :  { %3503 = vmatprep.subr.bf16.mxu1 %v4368_v36  ;;  %v4320_v36 = vcombine.high %v537_v22, %v541_v23  ;;  %v625_v6 = vld [vmem:[#allocation2 + $0xf08] sm:$0xff] }
 0x15f   :  { %3413 = vmatmul.mubr.bf16.vlgmr.msra.gmra.mxu0 %v4665_v17  ;;  %v629_v7 = vld [vmem:[#allocation2 + $0xf28] sm:$0xff] }
 0x160   :  { %3454 = vmatmul.mubr.bf16.vlgmr.msra.gmra.mxu1 %v4669_v40  ;;  %3463 = vmatpush1.bf16.msra.mxu0 %v4239_v41  ;;  %v529_v41 = vld [vmem:[#allocation2 + $0xc08] sm:$0xff] }
 0x161   :  { %3494 = vmatprep.mubr.bf16.mxu0 %v4677_v31  ;;  %3504 = vmatpush1.bf16.msra.mxu1 %v4367_v44  ;;  %v4319_v44 = vcombine.low %v537_v22, %v541_v23  ;;  %v4312_v20 = vcombine.high %v529_v41, %v533_v42  ;;  %v489_v59 = vld [vmem:[#allocation2 + $0xac8] sm:$0xff] }
 0x162   :  { %3535 = vmatprep.mubr.bf16.mxu1 %v4681_v32  ;;  %3464 = vmatprep.subr.bf16.mxu0 %v4232_v19  ;;  %v4184_v19 = vcombine.high %v401_v37, %v405_v38  ;;  %v493_v18 = vld [vmem:[#allocation2 + $0xae8] sm:$0xff] }
 0x163   :  { %3505 = vmatprep.subr.bf16.mxu1 %v4360_v28  ;;  %v525_v28 = vld [vmem:[#allocation2 + $0xbe8] sm:$0xff] }
 0x164   :  { %3465 = vmatpush1.bf16.msra.mxu0 %v4231_v45  ;;  %v4183_v45 = vcombine.low %v401_v37, %v405_v38  ;;  %v617_v22 = vld [vmem:[#allocation2 + $0xec8] sm:$0xff] }
 0x165   :  { %3506 = vmatpush1.bf16.msra.mxu1 %v4359_v46  ;;  %3466 = vmatprep.subr.bf16.mxu0 %v4224_v47  ;;  %v4311_v46 = vcombine.low %v529_v41, %v533_v42  ;;  %v4304_v47 = vcombine.high %v521_v21, %v525_v28  ;;  %v621_v23 = vld [vmem:[#allocation2 + $0xee8] sm:$0xff] }
 0x166   :  { %3507 = vmatprep.subr.bf16.mxu1 %v4352_v50  ;;  %v4432_v50 = vcombine.high %v649_v33, %v653_v34  ;;  %v481_v37 = vld [vmem:[#allocation2 + $0xa88] sm:$0xff] }
 0x167   :  { %v485_v38 = vld [vmem:[#allocation2 + $0xaa8] sm:$0xff] }
 0x168   :  { %3467 = vmatpush1.bf16.msra.mxu0 %v4223_v56  ;;  %v4303_v56 = vcombine.low %v521_v21, %v525_v28  ;;  %v609_v41 = vld [vmem:[#allocation2 + $0xe88] sm:$0xff] }
 0x169   :  { %3508 = vmatpush1.bf16.msra.mxu1 %v4351_v58  ;;  %3468 = vmatprep.subr.bf16.mxu0 %v4216_v55  ;;  %v4431_v58 = vcombine.low %v649_v33, %v653_v34  ;;  %v4296_v55 = vcombine.high %v513_v51, %v517_v52  ;;  %v613_v42 = vld [vmem:[#allocation2 + $0xea8] sm:$0xff] }
 0x16a   :  { %3509 = vmatprep.subr.bf16.mxu1 %v4344_v8  ;;  %v4424_v8 = vcombine.high %v641_v53, %v645_v54  ;;  %v473_v21 = vld [vmem:[#allocation2 + $0xa48] sm:$0xff] }
 0x16b   :  { %v477_v28 = vld [vmem:[#allocation2 + $0xa68] sm:$0xff] }
 0x16c   :  { %3469 = vmatpush1.bf16.msra.mxu0 %v4215_v0  ;;  %v4295_v0 = vcombine.low %v513_v51, %v517_v52  ;;  %v601_v33 = vld [vmem:[#allocation2 + $0xe48] sm:$0xff] }
 0x16d   :  { %3510 = vmatpush1.bf16.msra.mxu1 %v4343_v1  ;;  %3470 = vmatprep.subr.bf16.mxu0 %v4208_v2  ;;  %v4423_v1 = vcombine.low %v641_v53, %v645_v54  ;;  %v4288_v2 = vcombine.high %v505_v60, %v509_v61  ;;  %v605_v34 = vld [vmem:[#allocation2 + $0xe68] sm:$0xff] }
 0x16e   :  { %3511 = vmatprep.subr.bf16.mxu1 %v4336_v3  ;;  %v4416_v3 = vcombine.high %v633_v62, %v637_v63  ;;  %v465_v51 = vld [vmem:[#allocation2 + $0xa08] sm:$0xff] }
 0x16f   :  { %v469_v52 = vld [vmem:[#allocation2 + $0xa28] sm:$0xff] }
 0x170   :  { %3471 = vmatpush1.bf16.msra.mxu0 %v4207_v13  ;;  %v4287_v13 = vcombine.low %v505_v60, %v509_v61  ;;  %v593_v53 = vld [vmem:[#allocation2 + $0xe08] sm:$0xff]  ;;  %v202_v60 = vld [vmem:[#allocation2 + $0x1d0] sm:$0xff] }
 0x171   :  { %3512 = vmatpush1.bf16.msra.mxu1 %v4335_v15  ;;  %3472 = vmatprep.subr.bf16.mxu0 %v4200_v29  ;;  %v4415_v15 = vcombine.low %v633_v62, %v637_v63  ;;  %v4280_v29 = vcombine.high %v497_v4, %v501_v5  ;;  %v597_v54 = vld [vmem:[#allocation2 + $0xe28] sm:$0xff]  ;;  %v206_v61 = vld [vmem:[#allocation2 + $0x1f0] sm:$0xff] }
 0x172   :  { %3513 = vmatprep.subr.bf16.mxu1 %v4328_v16  ;;  %v4408_v16 = vcombine.high %v625_v6, %v629_v7  ;;  %v330_v62 = vld [vmem:[#allocation2 + $0x5d0] sm:$0xff] }
 0x173   :  { %v334_v63 = vld [vmem:[#allocation2 + $0x5f0] sm:$0xff] }
 0x174   :  { %3473 = vmatpush1.bf16.msra.mxu0 %v4199_v27  ;;  %v4279_v27 = vcombine.low %v497_v4, %v501_v5  ;;  %v194_v4 = vld [vmem:[#allocation2 + $0x190] sm:$0xff] }
 0x175   :  { %3514 = vmatpush1.bf16.msra.mxu1 %v4327_v30  ;;  %3474 = vmatprep.subr.bf16.mxu0 %v4192_v35  ;;  %v4407_v30 = vcombine.low %v625_v6, %v629_v7  ;;  %v4272_v35 = vcombine.high %v489_v59, %v493_v18  ;;  %v198_v5 = vld [vmem:[#allocation2 + $0x1b0] sm:$0xff]  ;;  %v3985_v6 = vcombine.low %v202_v60, %v206_v61 }
 0x176   :  { %3515 = vmatprep.subr.bf16.mxu1 %v4320_v36  ;;  %v4400_v36 = vcombine.high %v617_v22, %v621_v23  ;;  %v322_v7 = vld [vmem:[#allocation2 + $0x590] sm:$0xff] }
 0x178   :  { %3475 = vmatpush1.bf16.msra.mxu0 %v4191_v43  ;;  %v4271_v43 = vcombine.low %v489_v59, %v493_v18  ;;  %v190_v59 = vld [vmem:[#allocation2 + $0x170] sm:$0xff] }
 0x179   :  { %3516 = vmatpush1.bf16.msra.mxu1 %v4319_v44  ;;  %3476 = vmatprep.subr.bf16.mxu0 %v4184_v19  ;;  %v4399_v44 = vcombine.low %v617_v22, %v621_v23  ;;  %v4264_v19 = vcombine.high %v481_v37, %v485_v38 }
 0x17a   :  { %3517 = vmatprep.subr.bf16.mxu1 %v4312_v20  ;;  %v4392_v20 = vcombine.high %v609_v41, %v613_v42 }
 0x17c   :  { %3477 = vmatpush1.bf16.msra.mxu0 %v4183_v45  ;;  %v4263_v45 = vcombine.low %v481_v37, %v485_v38 }
 0x17d   :  { %3518 = vmatpush1.bf16.msra.mxu1 %v4311_v46  ;;  %3478 = vmatprep.subr.bf16.mxu0 %v4304_v47  ;;  %v4391_v46 = vcombine.low %v609_v41, %v613_v42  ;;  %v4256_v47 = vcombine.high %v473_v21, %v477_v28 }
 0x17e   :  { %3519 = vmatprep.subr.bf16.mxu1 %v4432_v50  ;;  %v4384_v50 = vcombine.high %v601_v33, %v605_v34 }
 0x180   :  { %3479 = vmatpush2.bf16.msra.mxu0 %v4303_v56  ;;  %v4255_v56 = vcombine.low %v473_v21, %v477_v28 }
 0x181   :  { %3520 = vmatpush2.bf16.msra.mxu1 %v4431_v58  ;;  %3480 = vmatprep.subr.bf16.mxu0 %v4296_v55  ;;  %v4383_v58 = vcombine.low %v601_v33, %v605_v34  ;;  %v4248_v55 = vcombine.high %v465_v51, %v469_v52  ;;  %v306_v33 = vld [vmem:[#allocation2 + $0x510] sm:$0xff] }
 0x182   :  { %3521 = vmatprep.subr.bf16.mxu1 %v4424_v8  ;;  %v4376_v8 = vcombine.high %v593_v53, %v597_v54  ;;  %v310_v34 = vld [vmem:[#allocation2 + $0x530] sm:$0xff] }
 0x184   :  { %3481 = vmatpush2.bf16.msra.mxu0 %v4295_v0  ;;  %v4247_v0 = vcombine.low %v465_v51, %v469_v52  ;;  %v4090_v52 = vcombine.high %v306_v33, %v310_v34 }
 0x185   :  { %3522 = vmatpush2.bf16.msra.mxu1 %v4423_v1  ;;  %3482 = vmatprep.subr.bf16.mxu0 %v4288_v2  ;;  %v4375_v1 = vcombine.low %v593_v53, %v597_v54  ;;  %v3986_v2 = vcombine.high %v202_v60, %v206_v61  ;;  %v170_v53 = vld [vmem:[#allocation2 + $0xd0] sm:$0xff] }
 0x186   :  { %3523 = vmatprep.subr.bf16.mxu1 %v4416_v3  ;;  %v4114_v3 = vcombine.high %v330_v62, %v334_v63  ;;  %v174_v54 = vld [vmem:[#allocation2 + $0xf0] sm:$0xff] }
 0x187   :  { %v3954_v60 = vcombine.high %v170_v53, %v174_v54 }
 0x188   :  { %3483 = vmatpush2.bf16.msra.mxu0 %v4287_v13  ;;  %v326_v13 = vld [vmem:[#allocation2 + $0x5b0] sm:$0xff] }
 0x189   :  { %3524 = vmatpush2.bf16.msra.mxu1 %v4415_v15  ;;  %3484 = vmatprep.subr.bf16.mxu0 %v4280_v29  ;;  %v4113_v15 = vcombine.low %v330_v62, %v334_v63  ;;  %v3978_v29 = vcombine.high %v194_v4, %v198_v5  ;;  %v4106_v23 = vcombine.high %v322_v7, %v326_v13  ;;  %v162_v62 = vld [vmem:[#allocation2 + $0x90] sm:$0xff] }
 0x18a   :  { %3525 = vmatprep.subr.bf16.mxu1 %v4408_v16  ;;  %v186_v16 = vld [vmem:[#allocation2 + $0x150] sm:$0xff]  ;;  %v4105_v41 = vcombine.low %v322_v7, %v326_v13 }
 0x18b   :  { %v3970_v42 = vcombine.high %v186_v16, %v190_v59  ;;  %v166_v63 = vld [vmem:[#allocation2 + $0xb0] sm:$0xff] }
 0x18c   :  { %3485 = vmatpush2.bf16.msra.mxu0 %v4279_v27  ;;  %v314_v27 = vld [vmem:[#allocation2 + $0x550] sm:$0xff] }
 0x18d   :  { %3526 = vmatpush2.bf16.msra.mxu1 %v4407_v30  ;;  %3486 = vmatprep.subr.bf16.mxu0 %v4272_v35  ;;  %v318_v30 = vld [vmem:[#allocation2 + $0x570] sm:$0xff] }
 0x18e   :  { %3527 = vmatprep.subr.bf16.mxu1 %v4400_v36  ;;  %v3977_v36 = vcombine.low %v194_v4, %v198_v5  ;;  %v3946_v4 = vcombine.high %v162_v62, %v166_v63  ;;  %v158_v7 = vld [vmem:[#allocation2 + $0x70] sm:$0xff] }
 0x18f   :  { %v282_v13 = vld [vmem:[#allocation2 + $0x450] sm:$0xff] }
 0x190   :  { %3487 = vmatpush2.bf16.msra.mxu0 %v4271_v43 }
 0x191   :  { %3528 = vmatpush2.bf16.msra.mxu1 %v4399_v44  ;;  %3488 = vmatprep.subr.bf16.mxu0 %v4264_v19  ;;  %v4098_v44 = vcombine.high %v314_v27, %v318_v30  ;;  %v178_v19 = vld [vmem:[#allocation2 + $0x110] sm:$0xff] }
 0x192   :  { %3529 = vmatprep.subr.bf16.mxu1 %v4392_v20  ;;  %v182_v20 = vld [vmem:[#allocation2 + $0x130] sm:$0xff] }
 0x193   :  { %v3962_v51 = vcombine.high %v178_v19, %v182_v20 }
 0x194   :  { %3489 = vmatpush2.bf16.msra.mxu0 %v4263_v45  ;;  %v3969_v45 = vcombine.low %v186_v16, %v190_v59 }
 0x195   :  { %3530 = vmatpush2.bf16.msra.mxu1 %v4391_v46  ;;  %3490 = vmatprep.subr.bf16.mxu0 %v4256_v47 }
 0x196   :  { %3531 = vmatprep.subr.bf16.mxu1 %v4384_v50  ;;  %v4097_v50 = vcombine.low %v314_v27, %v318_v30  ;;  %v274_v27 = vld [vmem:[#allocation2 + $0x410] sm:$0xff] }
 0x197   :  { %v278_v30 = vld [vmem:[#allocation2 + $0x430] sm:$0xff] }
 0x198   :  { %3491 = vmatpush2.bf16.msra.mxu0 %v4255_v56  ;;  %v298_v56 = vld [vmem:[#allocation2 + $0x4d0] sm:$0xff] }
 0x199   :  { %3532 = vmatpush2.bf16.msra.mxu1 %v4383_v58  ;;  %3492 = vmatprep.subr.bf16.mxu0 %v4248_v55  ;;  %v302_v58 = vld [vmem:[#allocation2 + $0x4f0] sm:$0xff]  ;;  %v3961_v55 = vcombine.low %v178_v19, %v182_v20 }
 0x19a   :  { %3533 = vmatprep.subr.bf16.mxu1 %v4376_v8  ;;  %v4089_v8 = vcombine.low %v306_v33, %v310_v34  ;;  %v4082_v61 = vcombine.high %v298_v56, %v302_v58  ;;  %v394_v19 = vld [vmem:[#allocation2 + $0x7d0] sm:$0xff] }
 0x19b   :  { %v398_v20 = vld [vmem:[#allocation2 + $0x7f0] sm:$0xff] }
 0x19c   :  { %3493 = vmatpush2.bf16.msra.mxu0 %v4247_v0  ;;  %v290_v0 = vld [vmem:[#allocation2 + $0x490] sm:$0xff]  ;;  %v4178_v34 = vcombine.high %v394_v19, %v398_v20 }
 0x19d   :  { %3534 = vmatpush2.bf16.msra.mxu1 %v4375_v1  ;;  %3544 = vmatprep.subr.bf16.mxu0 %v3986_v2  ;;  %v294_v1 = vld [vmem:[#allocation2 + $0x4b0] sm:$0xff]  ;;  %v3953_v2 = vcombine.low %v170_v53, %v174_v54 }
 0x19e   :  { %3585 = vmatprep.subr.bf16.mxu1 %v4114_v3  ;;  %v4081_v3 = vcombine.low %v298_v56, %v302_v58  ;;  %v4074_v5 = vcombine.high %v290_v0, %v294_v1  ;;  %v4073_v16 = vcombine.low %v290_v0, %v294_v1  ;;  %v250_v56 = vld [vmem:[#allocation2 + $0x350] sm:$0xff] }
 0x19f   :  { %3495 = vmatmul.mubr.bf16.vlgmr.msra.gmra.mxu0 %v4701_v57  ;;  %v3250_v18 = vpop.f32.mrf.mxu0  ;;  %v3291_v22 = vpop.f32.mrf.mxu1  ;;  %v254_v58 = vld [vmem:[#allocation2 + $0x370] sm:$0xff] }
 0x1a0   :  { %3536 = vmatmul.mubr.bf16.vlgmr.msra.gmra.mxu1 %v4705_v39  ;;  %v4717_v35 = vadd.f32 %v3291_v22, %v3250_v18  ;;  %3545 = vmatpush1.bf16.msra.mxu0 %v3985_v6  ;;  %v154_v6 = vld [vmem:[#allocation2 + $0x50] sm:$0xff] }
 0x1a1   :  { %3576 = vmatprep.mubr.bf16.mxu0 %v4657_v24  ;;  %3586 = vmatpush1.bf16.msra.mxu1 %v4113_v15  ;;  %v3252_v37 = vpop.f32.mrf.mxu0  ;;  %v3293_v38 = vpop.f32.mrf.mxu1  ;;  %v286_v15 = vld [vmem:[#allocation2 + $0x470] sm:$0xff]  ;;  %v3938_v59 = vcombine.high %v154_v6, %v158_v7 }
 0x1a2   :  { %3617 = vmatprep.mubr.bf16.mxu1 %v4661_v26  ;;  %v4721_v43 = vadd.f32 %v3293_v38, %v3252_v37  ;;  %3546 = vmatprep.subr.bf16.mxu0 %v3978_v29  ;;  %v3945_v29 = vcombine.low %v162_v62, %v166_v63  ;;  %v4066_v18 = vcombine.high %v282_v13, %v286_v15  ;;  %v146_v22 = vld [vmem:[#allocation2 + $0x10] sm:$0xff] }
 0x1a3   :  { %3587 = vmatprep.subr.bf16.mxu1 %v4106_v23  ;;  %v3254_v21 = vpop.f32.mrf.mxu0  ;;  %v3295_v28 = vpop.f32.mrf.mxu1  ;;  %v150_v23 = vld [vmem:[#allocation2 + $0x30] sm:$0xff]  ;;  %v4065_v37 = vcombine.low %v282_v13, %v286_v15  ;;  %v4034_v62 = vcombine.high %v250_v56, %v254_v58 }
 0x1a4   :  { %3547 = vmatpush1.bf16.msra.mxu0 %v3977_v36  ;;  %v3937_v36 = vcombine.low %v154_v6, %v158_v7  ;;  %v3930_v38 = vcombine.high %v146_v22, %v150_v23  ;;  %v3929_v21 = vcombine.low %v146_v22, %v150_v23  ;;  %v4057_v28 = vcombine.low %v274_v27, %v278_v30  ;;  %v242_v0 = vld [vmem:[#allocation2 + $0x310] sm:$0xff] }
 0x1a5   :  { %3588 = vmatpush1.bf16.msra.mxu1 %v4105_v41  ;;  %v3255_v46 = vpop.f32.mrf.mxu0  ;;  %v3296_v47 = vpop.f32.mrf.mxu1  ;;  %3548 = vmatprep.subr.bf16.mxu0 %v3970_v42  ;;  %v4058_v41 = vcombine.high %v274_v27, %v278_v30  ;;  %v266_v42 = vld [vmem:[#allocation2 + $0x3d0] sm:$0xff] }
 0x1a6   :  { %3589 = vmatprep.subr.bf16.mxu1 %v4098_v44  ;;  %v270_v44 = vld [vmem:[#allocation2 + $0x3f0] sm:$0xff] }
 0x1a7   :  { %v4050_v33 = vcombine.high %v266_v42, %v270_v44  ;;  %v262_v46 = vld [vmem:[#allocation2 + $0x3b0] sm:$0xff] }
 0x1a8   :  { %3549 = vmatpush1.bf16.msra.mxu0 %v3969_v45  ;;  %v258_v45 = vld [vmem:[#allocation2 + $0x390] sm:$0xff] }
 0x1a9   :  { %3590 = vmatpush1.bf16.msra.mxu1 %v4097_v50  ;;  %3550 = vmatprep.subr.bf16.mxu0 %v3962_v51  ;;  %v386_v47 = vld [vmem:[#allocation2 + $0x790] sm:$0xff]  ;;  %v4049_v51 = vcombine.low %v266_v42, %v270_v44  ;;  %v4042_v53 = vcombine.high %v258_v45, %v262_v46 }
 0x1aa   :  { %3591 = vmatprep.subr.bf16.mxu1 %v4090_v52  ;;  %v390_v50 = vld [vmem:[#allocation2 + $0x7b0] sm:$0xff]  ;;  %v4177_v52 = vcombine.low %v394_v19, %v398_v20 }
 0x1ab   :  { %v4170_v54 = vcombine.high %v386_v47, %v390_v50  ;;  %v246_v1 = vld [vmem:[#allocation2 + $0x330] sm:$0xff] }
 0x1ac   :  { %3551 = vmatpush1.bf16.msra.mxu0 %v3961_v55  ;;  %v378_v55 = vld [vmem:[#allocation2 + $0x750] sm:$0xff]  ;;  %v4026_v6 = vcombine.high %v242_v0, %v246_v1 }
 0x1ad   :  { %3592 = vmatpush1.bf16.msra.mxu1 %v4089_v8  ;;  %3552 = vmatprep.subr.bf16.mxu0 %v3954_v60  ;;  %v382_v8 = vld [vmem:[#allocation2 + $0x770] sm:$0xff]  ;;  %v4041_v60 = vcombine.low %v258_v45, %v262_v46 }
 0x1ae   :  { %3593 = vmatprep.subr.bf16.mxu1 %v4082_v61  ;;  %v4169_v61 = vcombine.low %v386_v47, %v390_v50  ;;  %v4162_v63 = vcombine.high %v378_v55, %v382_v8  ;;  %v234_v13 = vld [vmem:[#allocation2 + $0x2d0] sm:$0xff] }
 0x1af   :  { %v238_v15 = vld [vmem:[#allocation2 + $0x2f0] sm:$0xff] }
 0x1b0   :  { %3553 = vmatpush1.bf16.msra.mxu0 %v3953_v2  ;;  %v370_v2 = vld [vmem:[#allocation2 + $0x710] sm:$0xff]  ;;  %v4018_v22 = vcombine.high %v234_v13, %v238_v15 }
 0x1b1   :  { %3594 = vmatpush1.bf16.msra.mxu1 %v4081_v3  ;;  %3554 = vmatprep.subr.bf16.mxu0 %v3946_v4  ;;  %v374_v3 = vld [vmem:[#allocation2 + $0x730] sm:$0xff]  ;;  %v4033_v4 = vcombine.low %v250_v56, %v254_v58 }
 0x1b2   :  { %3595 = vmatprep.subr.bf16.mxu1 %v4074_v5  ;;  %v4161_v5 = vcombine.low %v378_v55, %v382_v8  ;;  %v4154_v7 = vcombine.high %v370_v2, %v374_v3  ;;  %v226_v27 = vld [vmem:[#allocation2 + $0x290] sm:$0xff] }
 0x1b3   :  { %v230_v30 = vld [vmem:[#allocation2 + $0x2b0] sm:$0xff] }
 0x1b4   :  { %3555 = vmatpush1.bf16.msra.mxu0 %v3945_v29  ;;  %v362_v29 = vld [vmem:[#allocation2 + $0x6d0] sm:$0xff]  ;;  %v4010_v42 = vcombine.high %v226_v27, %v230_v30 }
 0x1b5   :  { %3596 = vmatpush1.bf16.msra.mxu1 %v4073_v16  ;;  %3556 = vmatprep.subr.bf16.mxu0 %v3938_v59  ;;  %v366_v16 = vld [vmem:[#allocation2 + $0x6f0] sm:$0xff]  ;;  %v4025_v59 = vcombine.low %v242_v0, %v246_v1 }
 0x1b6   :  { %3597 = vmatprep.subr.bf16.mxu1 %v4066_v18  ;;  %v4153_v18 = vcombine.low %v370_v2, %v374_v3  ;;  %v4146_v23 = vcombine.high %v362_v29, %v366_v16  ;;  %v218_v19 = vld [vmem:[#allocation2 + $0x250] sm:$0xff] }
 0x1b7   :  { %v222_v20 = vld [vmem:[#allocation2 + $0x270] sm:$0xff] }
 0x1b8   :  { %3557 = vmatpush1.bf16.msra.mxu0 %v3937_v36  ;;  %v354_v36 = vld [vmem:[#allocation2 + $0x690] sm:$0xff]  ;;  %v4002_v45 = vcombine.high %v218_v19, %v222_v20 }
 0x1b9   :  { %3598 = vmatpush1.bf16.msra.mxu1 %v4065_v37  ;;  %3558 = vmatprep.subr.bf16.mxu0 %v3930_v38  ;;  %v358_v37 = vld [vmem:[#allocation2 + $0x6b0] sm:$0xff]  ;;  %v4017_v38 = vcombine.low %v234_v13, %v238_v15 }
 0x1ba   :  { %3599 = vmatprep.subr.bf16.mxu1 %v4058_v41  ;;  %v4145_v41 = vcombine.low %v362_v29, %v366_v16  ;;  %v4138_v44 = vcombine.high %v354_v36, %v358_v37  ;;  %v210_v47 = vld [vmem:[#allocation2 + $0x210] sm:$0xff] }
 0x1bb   :  { %v214_v50 = vld [vmem:[#allocation2 + $0x230] sm:$0xff] }
 0x1bc   :  { %3559 = vmatpush1.bf16.msra.mxu0 %v3929_v21  ;;  %v346_v21 = vld [vmem:[#allocation2 + $0x650] sm:$0xff]  ;;  %v3994_v56 = vcombine.high %v210_v47, %v214_v50 }
 0x1bd   :  { %3600 = vmatpush1.bf16.msra.mxu1 %v4057_v28  ;;  %3560 = vmatprep.subr.bf16.mxu0 %v4050_v33  ;;  %v350_v28 = vld [vmem:[#allocation2 + $0x670] sm:$0xff]  ;;  %v4009_v33 = vcombine.low %v226_v27, %v230_v30 }
 0x1be   :  { %3601 = vmatprep.subr.bf16.mxu1 %v4178_v34  ;;  %v4137_v34 = vcombine.low %v354_v36, %v358_v37  ;;  %v4130_v46 = vcombine.high %v346_v21, %v350_v28  ;;  %v458_v55 = vld [vmem:[#allocation2 + $0x9d0] sm:$0xff] }
 0x1bf   :  { %v462_v8 = vld [vmem:[#allocation2 + $0x9f0] sm:$0xff] }
 0x1c0   :  { %3561 = vmatpush2.bf16.msra.mxu0 %v4049_v51  ;;  %v338_v51 = vld [vmem:[#allocation2 + $0x610] sm:$0xff]  ;;  %v4242_v0 = vcombine.high %v458_v55, %v462_v8 }
 0x1c1   :  { %3602 = vmatpush2.bf16.msra.mxu1 %v4177_v52  ;;  %3562 = vmatprep.subr.bf16.mxu0 %v4042_v53  ;;  %v342_v52 = vld [vmem:[#allocation2 + $0x630] sm:$0xff]  ;;  %v4001_v53 = vcombine.low %v218_v19, %v222_v20 }
 0x1c2   :  { %3603 = vmatprep.subr.bf16.mxu1 %v4170_v54  ;;  %v4129_v54 = vcombine.low %v346_v21, %v350_v28  ;;  %v4122_v58 = vcombine.high %v338_v51, %v342_v52  ;;  %v450_v2 = vld [vmem:[#allocation2 + $0x990] sm:$0xff] }
 0x1c3   :  { %v454_v3 = vld [vmem:[#allocation2 + $0x9b0] sm:$0xff] }
 0x1c4   :  { %3563 = vmatpush2.bf16.msra.mxu0 %v4041_v60  ;;  %v586_v60 = vld [vmem:[#allocation2 + $0xdd0] sm:$0xff]  ;;  %v4234_v13 = vcombine.high %v450_v2, %v454_v3  ;;  %v4233_v30 = vcombine.low %v450_v2, %v454_v3 }
 0x1c5   :  { %3604 = vmatpush2.bf16.msra.mxu1 %v4169_v61  ;;  %3564 = vmatprep.subr.bf16.mxu0 %v4034_v62  ;;  %v590_v61 = vld [vmem:[#allocation2 + $0xdf0] sm:$0xff]  ;;  %v3993_v62 = vcombine.low %v210_v47, %v214_v50 }
 0x1c6   :  { %3605 = vmatprep.subr.bf16.mxu1 %v4162_v63  ;;  %v4121_v63 = vcombine.low %v338_v51, %v342_v52  ;;  %v4370_v1 = vcombine.high %v586_v60, %v590_v61  ;;  %v442_v15 = vld [vmem:[#allocation2 + $0x950] sm:$0xff] }
 0x1c7   :  { %v446_v29 = vld [vmem:[#allocation2 + $0x970] sm:$0xff] }
 0x1c8   :  { %3565 = vmatpush2.bf16.msra.mxu0 %v4033_v4  ;;  %v4241_v4 = vcombine.low %v458_v55, %v462_v8  ;;  %v434_v20 = vld [vmem:[#allocation2 + $0x910] sm:$0xff] }
 0x1c9   :  { %3606 = vmatpush2.bf16.msra.mxu1 %v4161_v5  ;;  %3566 = vmatprep.subr.bf16.mxu0 %v4026_v6  ;;  %v578_v5 = vld [vmem:[#allocation2 + $0xd90] sm:$0xff] }
 0x1ca   :  { %3607 = vmatprep.subr.bf16.mxu1 %v4154_v7  ;;  %v582_v6 = vld [vmem:[#allocation2 + $0xdb0] sm:$0xff]  ;;  %v4369_v7 = vcombine.low %v586_v60, %v590_v61 }
 0x1cb   :  { %v554_v55 = vld [vmem:[#allocation2 + $0xcd0] sm:$0xff] }
 0x1cc   :  { %3567 = vmatpush2.bf16.msra.mxu0 %v4025_v59  ;;  %v558_v8 = vld [vmem:[#allocation2 + $0xcf0] sm:$0xff] }
 0x1cd   :  { %3608 = vmatpush2.bf16.msra.mxu1 %v4153_v18  ;;  %3568 = vmatprep.subr.bf16.mxu0 %v4018_v22  ;;  %v4362_v18 = vcombine.high %v578_v5, %v582_v6  ;;  %v570_v22 = vld [vmem:[#allocation2 + $0xd50] sm:$0xff] }
 0x1ce   :  { %3609 = vmatprep.subr.bf16.mxu1 %v4146_v23  ;;  %v574_v23 = vld [vmem:[#allocation2 + $0xd70] sm:$0xff] }
 0x1cf   :  { %v4354_v19 = vcombine.high %v570_v22, %v574_v23  ;;  %v4353_v51 = vcombine.low %v570_v22, %v574_v23  ;;  %v546_v2 = vld [vmem:[#allocation2 + $0xc90] sm:$0xff] }
 0x1d0   :  { %3569 = vmatpush2.bf16.msra.mxu0 %v4017_v38  ;;  %v4361_v38 = vcombine.low %v578_v5, %v582_v6  ;;  %v402_v23 = vld [vmem:[#allocation2 + $0x810] sm:$0xff] }
 0x1d1   :  { %3610 = vmatpush2.bf16.msra.mxu1 %v4145_v41  ;;  %3570 = vmatprep.subr.bf16.mxu0 %v4010_v42  ;;  %v4226_v41 = vcombine.high %v442_v15, %v446_v29 }
 0x1d2   :  { %3611 = vmatprep.subr.bf16.mxu1 %v4138_v44 }
 0x1d4   :  { %3571 = vmatpush2.bf16.msra.mxu0 %v4009_v33  ;;  %v562_v33 = vld [vmem:[#allocation2 + $0xd10] sm:$0xff] }
 0x1d5   :  { %3612 = vmatpush2.bf16.msra.mxu1 %v4137_v34  ;;  %3572 = vmatprep.subr.bf16.mxu0 %v4002_v45  ;;  %v566_v34 = vld [vmem:[#allocation2 + $0xd30] sm:$0xff] }
 0x1d6   :  { %3613 = vmatprep.subr.bf16.mxu1 %v4130_v46  ;;  %v4225_v46 = vcombine.low %v442_v15, %v446_v29  ;;  %v538_v15 = vld [vmem:[#allocation2 + $0xc50] sm:$0xff] }
 0x1d7   :  { %v542_v29 = vld [vmem:[#allocation2 + $0xc70] sm:$0xff] }
 0x1d8   :  { %3573 = vmatpush2.bf16.msra.mxu0 %v4001_v53  ;;  %v4322_v22 = vcombine.high %v538_v15, %v542_v29 }
 0x1d9   :  { %3614 = vmatpush2.bf16.msra.mxu1 %v4129_v54  ;;  %3574 = vmatprep.subr.bf16.mxu0 %v3994_v56  ;;  %v4346_v54 = vcombine.high %v562_v33, %v566_v34  ;;  %v426_v56 = vld [vmem:[#allocation2 + $0x8d0] sm:$0xff] }
 0x1da   :  { %3615 = vmatprep.subr.bf16.mxu1 %v4122_v58  ;;  %v430_v58 = vld [vmem:[#allocation2 + $0x8f0] sm:$0xff] }
 0x1db   :  { %v4209_v3 = vcombine.low %v426_v56, %v430_v58 }
 0x1dc   :  { %3575 = vmatpush2.bf16.msra.mxu0 %v3993_v62  ;;  %v4345_v62 = vcombine.low %v562_v33, %v566_v34 }
 0x1dd   :  { %3616 = vmatpush2.bf16.msra.mxu1 %v4121_v63  ;;  %3626 = vmatprep.subr.bf16.mxu0 %v4242_v0  ;;  %v4210_v63 = vcombine.high %v426_v56, %v430_v58  ;;  %v4338_v0 = vcombine.high %v554_v55, %v558_v8  ;;  %v510_v56 = vld [vmem:[#allocation2 + $0xb70] sm:$0xff] }
 0x1de   :  { %3667 = vmatprep.subr.bf16.mxu1 %v4370_v1  ;;  %v418_v1 = vld [vmem:[#allocation2 + $0x890] sm:$0xff] }
 0x1df   :  { %v3332_v16 = vpop.f32.mrf.mxu0  ;;  %v3373_v59 = vpop.f32.mrf.mxu1  ;;  %3577 = vmatmul.mubr.bf16.vlgmr.msra.gmra.mxu0 %v4665_v17  ;;  %v634_v58 = vld [vmem:[#allocation2 + $0xf50] sm:$0xff] }
 0x1e0   :  { %v3333_v27 = vadd.f32 %v3332_v16, %v4717_v35  ;;  %3618 = vmatmul.mubr.bf16.vlgmr.msra.gmra.mxu1 %v4669_v40  ;;  %3627 = vmatpush1.bf16.msra.mxu0 %v4241_v4  ;;  %v438_v35 = vld [vmem:[#allocation2 + $0x930] sm:$0xff]  ;;  %v4337_v4 = vcombine.low %v554_v55, %v558_v8 }
 0x1e1   :  { %3658 = vmatprep.mubr.bf16.mxu0 %v4677_v31  ;;  %3668 = vmatpush1.bf16.msra.mxu1 %v4369_v7  ;;  %v3334_v36 = vpop.f32.mrf.mxu0  ;;  %v3375_v37 = vpop.f32.mrf.mxu1  ;;  %v4218_v52 = vcombine.high %v434_v20, %v438_v35  ;;  %v4217_v61 = vcombine.low %v434_v20, %v438_v35  ;;  %v410_v7 = vld [vmem:[#allocation2 + $0x850] sm:$0xff] }
 0x1e2   :  { %v3374_v42 = vadd.f32 %v3373_v59, %v3333_v27  ;;  %3699 = vmatprep.mubr.bf16.mxu1 %v4681_v32  ;;  %v3335_v44 = vadd.f32 %v3334_v36, %v4721_v43  ;;  %3628 = vmatprep.subr.bf16.mxu0 %v4234_v13  ;;  %v414_v13 = vld [vmem:[#allocation2 + $0x870] sm:$0xff] }
 0x1e3   :  { %v3336_v21 = vpop.f32.mrf.mxu0  ;;  %v3377_v28 = vpop.f32.mrf.mxu1  ;;  %3669 = vmatprep.subr.bf16.mxu1 %v4362_v18  ;;  %v4194_v18 = vcombine.high %v410_v7, %v414_v13  ;;  %v406_v27 = vld [vmem:[#allocation2 + $0x830] sm:$0xff] }
 0x1e4   :  { %v3376_v45 = vadd.f32 %v3375_v37, %v3335_v44  ;;  %3629 = vmatpush1.bf16.msra.mxu0 %v4233_v30  ;;  %v3872_v43 = vmul.f32 %v3374_v42, %v4641_v11  ;;  %v422_v11 = vld [vmem:[#allocation2 + $0x8b0] sm:$0xff]  ;;  %v4193_v37 = vcombine.low %v410_v7, %v414_v13  ;;  %v4185_v21 = vcombine.low %v402_v23, %v406_v27 }
 0x1e5   :  { %3670 = vmatpush1.bf16.msra.mxu1 %v4361_v38  ;;  %v3337_v47 = vpop.f32.mrf.mxu0  ;;  %v3378_v50 = vpop.f32.mrf.mxu1  ;;  %3630 = vmatprep.subr.bf16.mxu0 %v4226_v41  ;;  %v4202_v5 = vcombine.high %v418_v1, %v422_v11  ;;  %v4201_v16 = vcombine.low %v418_v1, %v422_v11  ;;  %v530_v30 = vld [vmem:[#allocation2 + $0xc10] sm:$0xff]  ;;  %v4321_v38 = vcombine.low %v538_v15, %v542_v29 }
 0x1e6   :  { %v3873_v53 = vmul.f32 %v3376_v45, %v4633_v9  ;;  %3671 = vmatprep.subr.bf16.mxu1 %v4354_v19  ;;  %v550_v9 = vld [vmem:[#allocation2 + $0xcb0] sm:$0xff]  ;;  %v4186_v41 = vcombine.high %v402_v23, %v406_v27 }
 0x1e7   :  { %v4330_v6 = vcombine.high %v546_v2, %v550_v9  ;;  %v4329_v59 = vcombine.low %v546_v2, %v550_v9  ;;  %v534_v36 = vld [vmem:[#allocation2 + $0xc30] sm:$0xff] }
 0x1e8   :  { %v4731_v60 = vadd.f32 %v3873_v53, %v3872_v43  ;;  %3631 = vmatpush1.bf16.msra.mxu0 %v4225_v46  ;;  %v4314_v42 = vcombine.high %v530_v30, %v534_v36  ;;  %v522_v44 = vld [vmem:[#allocation2 + $0xbd0] sm:$0xff]  ;;  %v4313_v28 = vcombine.low %v530_v30, %v534_v36 }
 0x1e9   :  { %3672 = vmatpush1.bf16.msra.mxu1 %v4353_v51  ;;  %3632 = vmatprep.subr.bf16.mxu0 %v4218_v52  ;;  %v526_v19 = vld [vmem:[#allocation2 + $0xbf0] sm:$0xff] }
 0x1ea   :  { %3673 = vmatprep.subr.bf16.mxu1 %v4346_v54  ;;  %v650_v20 = vld [vmem:[#allocation2 + $0xfd0] sm:$0xff]  ;;  %v4306_v33 = vcombine.high %v522_v44, %v526_v19  ;;  %v4305_v51 = vcombine.low %v522_v44, %v526_v19 }
 0x1eb   :  { %v654_v35 = vld [vmem:[#allocation2 + $0xff0] sm:$0xff] }
 0x1ec   :  { %3633 = vmatpush1.bf16.msra.mxu0 %v4217_v61  ;;  %v4434_v34 = vcombine.high %v650_v20, %v654_v35  ;;  %v514_v45 = vld [vmem:[#allocation2 + $0xb90] sm:$0xff]  ;;  %v4433_v52 = vcombine.low %v650_v20, %v654_v35 }
 0x1ed   :  { %3674 = vmatpush1.bf16.msra.mxu1 %v4345_v62  ;;  %3634 = vmatprep.subr.bf16.mxu0 %v4210_v63  ;;  %v518_v46 = vld [vmem:[#allocation2 + $0xbb0] sm:$0xff] }
 0x1ee   :  { %3675 = vmatprep.subr.bf16.mxu1 %v4338_v0  ;;  %v642_v47 = vld [vmem:[#allocation2 + $0xf90] sm:$0xff]  ;;  %v4298_v43 = vcombine.high %v514_v45, %v518_v46  ;;  %v4297_v8 = vcombine.low %v514_v45, %v518_v46 }
 0x1ef   :  { %v646_v50 = vld [vmem:[#allocation2 + $0xfb0] sm:$0xff] }
 0x1f0   :  { %3635 = vmatpush1.bf16.msra.mxu0 %v4209_v3  ;;  %v4426_v53 = vcombine.high %v642_v47, %v646_v50  ;;  %v506_v54 = vld [vmem:[#allocation2 + $0xb50] sm:$0xff]  ;;  %v4425_v61 = vcombine.low %v642_v47, %v646_v50 }
 0x1f1   :  { %3676 = vmatpush1.bf16.msra.mxu1 %v4337_v4  ;;  %3636 = vmatprep.subr.bf16.mxu0 %v4202_v5  ;;  %v638_v55 = vld [vmem:[#allocation2 + $0xf70] sm:$0xff]  ;;  %v4290_v62 = vcombine.high %v506_v54, %v510_v56  ;;  %v4289_v9 = vcombine.low %v506_v54, %v510_v56  ;;  %v207_v54 = vld [vmem:[#allocation2 + $0x1f8] sm:$0xff] }
 0x1f2   :  { %3677 = vmatprep.subr.bf16.mxu1 %v4330_v6  ;;  %v4418_v63 = vcombine.high %v634_v58, %v638_v55  ;;  %v498_v0 = vld [vmem:[#allocation2 + $0xb10] sm:$0xff]  ;;  %v4417_v3 = vcombine.low %v634_v58, %v638_v55  ;;  %v331_v56 = vld [vmem:[#allocation2 + $0x5d8] sm:$0xff] }
 0x1f3   :  { %v502_v1 = vld [vmem:[#allocation2 + $0xb30] sm:$0xff]  ;;  %v335_v58 = vld [vmem:[#allocation2 + $0x5f8] sm:$0xff] }
 0x1f4   :  { %3637 = vmatpush1.bf16.msra.mxu0 %v4201_v16  ;;  %v626_v11 = vld [vmem:[#allocation2 + $0xf10] sm:$0xff]  ;;  %v4282_v4 = vcombine.high %v498_v0, %v502_v1  ;;  %v4281_v29 = vcombine.low %v498_v0, %v502_v1  ;;  %v199_v0 = vld [vmem:[#allocation2 + $0x1b8] sm:$0xff] }
 0x1f5   :  { %3678 = vmatpush1.bf16.msra.mxu1 %v4329_v59  ;;  %3638 = vmatprep.subr.bf16.mxu0 %v4194_v18  ;;  %v630_v2 = vld [vmem:[#allocation2 + $0xf30] sm:$0xff] }
 0x1f6   :  { %3679 = vmatprep.subr.bf16.mxu1 %v4322_v22  ;;  %v4410_v5 = vcombine.high %v626_v11, %v630_v2  ;;  %v490_v6 = vld [vmem:[#allocation2 + $0xad0] sm:$0xff]  ;;  %v4409_v16 = vcombine.low %v626_v11, %v630_v2  ;;  %v323_v11 = vld [vmem:[#allocation2 + $0x598] sm:$0xff] }
 0x1f7   :  { %v494_v7 = vld [vmem:[#allocation2 + $0xaf0] sm:$0xff]  ;;  %v327_v2 = vld [vmem:[#allocation2 + $0x5b8] sm:$0xff] }
 0x1f8   :  { %3639 = vmatpush1.bf16.msra.mxu0 %v4193_v37  ;;  %v618_v13 = vld [vmem:[#allocation2 + $0xed0] sm:$0xff]  ;;  %v4274_v59 = vcombine.high %v490_v6, %v494_v7  ;;  %v4273_v36 = vcombine.low %v490_v6, %v494_v7  ;;  %v4108_v7 = vcombine.high %v323_v11, %v327_v2 }
 0x1f9   :  { %3680 = vmatpush1.bf16.msra.mxu1 %v4321_v38  ;;  %3640 = vmatprep.subr.bf16.mxu0 %v4186_v41  ;;  %v622_v15 = vld [vmem:[#allocation2 + $0xef0] sm:$0xff] }
 0x1fa   :  { %3681 = vmatprep.subr.bf16.mxu1 %v4314_v42  ;;  %v4402_v18 = vcombine.high %v618_v13, %v622_v15  ;;  %v482_v22 = vld [vmem:[#allocation2 + $0xa90] sm:$0xff]  ;;  %v4401_v37 = vcombine.low %v618_v13, %v622_v15  ;;  %v315_v13 = vld [vmem:[#allocation2 + $0x558] sm:$0xff] }
 0x1fb   :  { %v486_v23 = vld [vmem:[#allocation2 + $0xab0] sm:$0xff]  ;;  %v319_v15 = vld [vmem:[#allocation2 + $0x578] sm:$0xff] }
 0x1fc   :  { %3641 = vmatpush1.bf16.msra.mxu0 %v4185_v21  ;;  %v610_v27 = vld [vmem:[#allocation2 + $0xe90] sm:$0xff]  ;;  %v4266_v38 = vcombine.high %v482_v22, %v486_v23  ;;  %v4265_v35 = vcombine.low %v482_v22, %v486_v23  ;;  %v4107_v22 = vcombine.low %v323_v11, %v327_v2 }
 0x1fd   :  { %3682 = vmatpush1.bf16.msra.mxu1 %v4313_v28  ;;  %3642 = vmatprep.subr.bf16.mxu0 %v4306_v33  ;;  %v614_v30 = vld [vmem:[#allocation2 + $0xeb0] sm:$0xff] }
 0x1fe   :  { %3683 = vmatprep.subr.bf16.mxu1 %v4434_v34  ;;  %v4394_v41 = vcombine.high %v610_v27, %v614_v30  ;;  %v474_v42 = vld [vmem:[#allocation2 + $0xa50] sm:$0xff]  ;;  %v4393_v21 = vcombine.low %v610_v27, %v614_v30  ;;  %v4100_v30 = vcombine.high %v315_v13, %v319_v15 }
 0x1ff   :  { %v478_v44 = vld [vmem:[#allocation2 + $0xa70] sm:$0xff] }
 0x200   :  { %3643 = vmatpush2.bf16.msra.mxu0 %v4305_v51  ;;  %v602_v19 = vld [vmem:[#allocation2 + $0xe50] sm:$0xff]  ;;  %v4258_v28 = vcombine.high %v474_v42, %v478_v44  ;;  %v4257_v50 = vcombine.low %v474_v42, %v478_v44  ;;  %v307_v42 = vld [vmem:[#allocation2 + $0x518] sm:$0xff] }
 0x201   :  { %3684 = vmatpush2.bf16.msra.mxu1 %v4433_v52  ;;  %3644 = vmatprep.subr.bf16.mxu0 %v4298_v43  ;;  %v606_v20 = vld [vmem:[#allocation2 + $0xe70] sm:$0xff]  ;;  %v311_v44 = vld [vmem:[#allocation2 + $0x538] sm:$0xff] }
 0x202   :  { %3685 = vmatprep.subr.bf16.mxu1 %v4426_v53  ;;  %v4386_v33 = vcombine.high %v602_v19, %v606_v20  ;;  %v466_v34 = vld [vmem:[#allocation2 + $0xa10] sm:$0xff]  ;;  %v4385_v51 = vcombine.low %v602_v19, %v606_v20  ;;  %v203_v53 = vld [vmem:[#allocation2 + $0x1d8] sm:$0xff] }
 0x203   :  { %v470_v45 = vld [vmem:[#allocation2 + $0xa30] sm:$0xff]  ;;  %v3987_v1 = vcombine.low %v203_v53, %v207_v54 }
 0x204   :  { %3645 = vmatpush2.bf16.msra.mxu0 %v4297_v8  ;;  %v594_v46 = vld [vmem:[#allocation2 + $0xe10] sm:$0xff]  ;;  %v4250_v52 = vcombine.high %v466_v34, %v470_v45  ;;  %v4249_v55 = vcombine.low %v466_v34, %v470_v45  ;;  %v175_v34 = vld [vmem:[#allocation2 + $0xf8] sm:$0xff] }
 0x205   :  { %3686 = vmatpush2.bf16.msra.mxu1 %v4425_v61  ;;  %3646 = vmatprep.subr.bf16.mxu0 %v4290_v62  ;;  %v598_v47 = vld [vmem:[#allocation2 + $0xe30] sm:$0xff]  ;;  %v3988_v61 = vcombine.high %v203_v53, %v207_v54  ;;  %v4116_v62 = vcombine.high %v331_v56, %v335_v58  ;;  %v299_v45 = vld [vmem:[#allocation2 + $0x4d8] sm:$0xff] }
 0x206   :  { %3687 = vmatprep.subr.bf16.mxu1 %v4418_v63  ;;  %v4378_v43 = vcombine.high %v594_v46, %v598_v47  ;;  %v4377_v8 = vcombine.low %v594_v46, %v598_v47  ;;  %v195_v63 = vld [vmem:[#allocation2 + $0x198] sm:$0xff] }
 0x207   :  { %v303_v46 = vld [vmem:[#allocation2 + $0x4f8] sm:$0xff] }
 0x208   :  { %3647 = vmatpush2.bf16.msra.mxu0 %v4289_v9  ;;  %v4115_v9 = vcombine.low %v331_v56, %v335_v58  ;;  %v167_v53 = vld [vmem:[#allocation2 + $0xb8] sm:$0xff] }
 0x209   :  { %3688 = vmatpush2.bf16.msra.mxu1 %v4417_v3  ;;  %3648 = vmatprep.subr.bf16.mxu0 %v4282_v4  ;;  %v3980_v3 = vcombine.high %v195_v63, %v199_v0  ;;  %v187_v4 = vld [vmem:[#allocation2 + $0x158] sm:$0xff] }
 0x20a   :  { %3689 = vmatprep.subr.bf16.mxu1 %v4410_v5  ;;  %v191_v5 = vld [vmem:[#allocation2 + $0x178] sm:$0xff] }
 0x20b   :  { %v3972_v23 = vcombine.high %v187_v4, %v191_v5  ;;  %v291_v54 = vld [vmem:[#allocation2 + $0x498] sm:$0xff] }
 0x20c   :  { %3649 = vmatpush2.bf16.msra.mxu0 %v4281_v29  ;;  %v295_v56 = vld [vmem:[#allocation2 + $0x4b8] sm:$0xff] }
 0x20d   :  { %3690 = vmatpush2.bf16.msra.mxu1 %v4409_v16  ;;  %3650 = vmatprep.subr.bf16.mxu0 %v4274_v59  ;;  %v3979_v16 = vcombine.low %v195_v63, %v199_v0  ;;  %v159_v63 = vld [vmem:[#allocation2 + $0x78] sm:$0xff]  ;;  %v4075_v2 = vcombine.low %v291_v54, %v295_v56 }
 0x20e   :  { %3691 = vmatprep.subr.bf16.mxu1 %v4402_v18  ;;  %v283_v0 = vld [vmem:[#allocation2 + $0x458] sm:$0xff] }
 0x210   :  { %3651 = vmatpush2.bf16.msra.mxu0 %v4273_v36  ;;  %v179_v36 = vld [vmem:[#allocation2 + $0x118] sm:$0xff] }
 0x211   :  { %3692 = vmatpush2.bf16.msra.mxu1 %v4401_v37  ;;  %3652 = vmatprep.subr.bf16.mxu0 %v4266_v38  ;;  %v183_v37 = vld [vmem:[#allocation2 + $0x138] sm:$0xff] }
 0x212   :  { %3693 = vmatprep.subr.bf16.mxu1 %v4394_v41  ;;  %v3963_v47 = vcombine.low %v179_v36, %v183_v37 }
 0x214   :  { %3653 = vmatpush2.bf16.msra.mxu0 %v4265_v35  ;;  %v4099_v35 = vcombine.low %v315_v13, %v319_v15 }
 0x215   :  { %3694 = vmatpush2.bf16.msra.mxu1 %v4393_v21  ;;  %3654 = vmatprep.subr.bf16.mxu0 %v4258_v28  ;;  %v3964_v21 = vcombine.high %v179_v36, %v183_v37  ;;  %v4092_v28 = vcombine.high %v307_v42, %v311_v44 }
 0x216   :  { %3695 = vmatprep.subr.bf16.mxu1 %v4386_v33  ;;  %v171_v33 = vld [vmem:[#allocation2 + $0xd8] sm:$0xff] }
 0x217   :  { %v3955_v58 = vcombine.low %v171_v33, %v175_v34 }
 0x218   :  { %3655 = vmatpush2.bf16.msra.mxu0 %v4257_v50  ;;  %v4091_v50 = vcombine.low %v307_v42, %v311_v44  ;;  %v259_v42 = vld [vmem:[#allocation2 + $0x398] sm:$0xff] }
 0x219   :  { %3696 = vmatpush2.bf16.msra.mxu1 %v4385_v51  ;;  %3656 = vmatprep.subr.bf16.mxu0 %v4250_v52  ;;  %v3956_v51 = vcombine.high %v171_v33, %v175_v34  ;;  %v4084_v52 = vcombine.high %v299_v45, %v303_v46  ;;  %v263_v44 = vld [vmem:[#allocation2 + $0x3b8] sm:$0xff] }
 0x21a   :  { %3697 = vmatprep.subr.bf16.mxu1 %v4378_v43  ;;  %v163_v43 = vld [vmem:[#allocation2 + $0x98] sm:$0xff] }
 0x21b   :  { %v3947_v11 = vcombine.low %v163_v43, %v167_v53  ;;  %v255_v33 = vld [vmem:[#allocation2 + $0x378] sm:$0xff] }
 0x21c   :  { %3657 = vmatpush2.bf16.msra.mxu0 %v4249_v55  ;;  %v4083_v55 = vcombine.low %v299_v45, %v303_v46  ;;  %v379_v34 = vld [vmem:[#allocation2 + $0x758] sm:$0xff]  ;;  %v4043_v46 = vcombine.low %v259_v42, %v263_v44 }
 0x21d   :  { %3698 = vmatpush2.bf16.msra.mxu1 %v4377_v8  ;;  %3708 = vmatprep.subr.bf16.mxu0 %v3988_v61  ;;  %v3948_v8 = vcombine.high %v163_v43, %v167_v53  ;;  %v4076_v61 = vcombine.high %v291_v54, %v295_v56  ;;  %v383_v45 = vld [vmem:[#allocation2 + $0x778] sm:$0xff] }
 0x21e   :  { %3749 = vmatprep.subr.bf16.mxu1 %v4116_v62  ;;  %v155_v62 = vld [vmem:[#allocation2 + $0x58] sm:$0xff] }
 0x21f   :  { %v3414_v6 = vpop.f32.mrf.mxu0  ;;  %3659 = vmatmul.mubr.bf16.vlgmr.msra.gmra.mxu0 %v4701_v57  ;;  %v3939_v13 = vcombine.low %v155_v62, %v159_v63  ;;  %v247_v43 = vld [vmem:[#allocation2 + $0x338] sm:$0xff] }
 0x220   :  { %v3455_v29 = vpop.f32.mrf.mxu1  ;;  %3700 = vmatmul.mubr.bf16.vlgmr.msra.gmra.mxu1 %v4705_v39  ;;  %3709 = vmatpush1.bf16.msra.mxu0 %v3987_v1  ;;  %v287_v1 = vld [vmem:[#allocation2 + $0x478] sm:$0xff] }
 0x221   :  { %v4735_v59 = vadd.f32 %v3455_v29, %v3414_v6  ;;  %3740 = vmatprep.mubr.bf16.mxu0 %v4657_v24  ;;  %3750 = vmatpush1.bf16.msra.mxu1 %v4115_v9  ;;  %v3416_v18 = vpop.f32.mrf.mxu0  ;;  %v3971_v24 = vcombine.low %v187_v4, %v191_v5  ;;  %v3940_v9 = vcombine.high %v155_v62, %v159_v63  ;;  %v147_v4 = vld [vmem:[#allocation2 + $0x18] sm:$0xff] }
 0x222   :  { %3781 = vmatprep.mubr.bf16.mxu1 %v4661_v26  ;;  %v3457_v27 = vpop.f32.mrf.mxu1  ;;  %3710 = vmatprep.subr.bf16.mxu0 %v3980_v3  ;;  %v4068_v3 = vcombine.high %v283_v0, %v287_v1  ;;  %v151_v5 = vld [vmem:[#allocation2 + $0x38] sm:$0xff]  ;;  %v4067_v15 = vcombine.low %v283_v0, %v287_v1 }
 0x223   :  { %v4739_v38 = vadd.f32 %v3457_v27, %v3416_v18  ;;  %v3418_v41 = vpop.f32.mrf.mxu0  ;;  %3751 = vmatprep.subr.bf16.mxu1 %v4108_v7  ;;  %v275_v6 = vld [vmem:[#allocation2 + $0x418] sm:$0xff]  ;;  %v3932_v29 = vcombine.high %v147_v4, %v151_v5 }
 0x224   :  { %v3459_v19 = vpop.f32.mrf.mxu1  ;;  %3711 = vmatpush1.bf16.msra.mxu0 %v3979_v16  ;;  %v279_v7 = vld [vmem:[#allocation2 + $0x438] sm:$0xff] }
 0x225   :  { %3752 = vmatpush1.bf16.msra.mxu1 %v4107_v22  ;;  %v3419_v20 = vpop.f32.mrf.mxu0  ;;  %3712 = vmatprep.subr.bf16.mxu0 %v3972_v23  ;;  %v4060_v16 = vcombine.high %v275_v6, %v279_v7  ;;  %v267_v18 = vld [vmem:[#allocation2 + $0x3d8] sm:$0xff]  ;;  %v4059_v36 = vcombine.low %v275_v6, %v279_v7 }
 0x226   :  { %v3460_v26 = vpop.f32.mrf.mxu1  ;;  %3753 = vmatprep.subr.bf16.mxu1 %v4100_v30  ;;  %v271_v22 = vld [vmem:[#allocation2 + $0x3f8] sm:$0xff]  ;;  %v3931_v30 = vcombine.low %v147_v4, %v151_v5 }
 0x227   :  { %v395_v23 = vld [vmem:[#allocation2 + $0x7d8] sm:$0xff]  ;;  %v4052_v37 = vcombine.high %v267_v18, %v271_v22  ;;  %v4051_v20 = vcombine.low %v267_v18, %v271_v22 }
 0x228   :  { %3713 = vmatpush1.bf16.msra.mxu0 %v3971_v24  ;;  %v399_v27 = vld [vmem:[#allocation2 + $0x7f8] sm:$0xff] }
 0x229   :  { %3754 = vmatpush1.bf16.msra.mxu1 %v4099_v35  ;;  %3714 = vmatprep.subr.bf16.mxu0 %v3964_v21  ;;  %v4180_v41 = vcombine.high %v395_v23, %v399_v27  ;;  %v387_v19 = vld [vmem:[#allocation2 + $0x798] sm:$0xff]  ;;  %v4179_v35 = vcombine.low %v395_v23, %v399_v27  ;;  %v4044_v21 = vcombine.high %v259_v42, %v263_v44 }
 0x22a   :  { %3755 = vmatprep.subr.bf16.mxu1 %v4092_v28  ;;  %v391_v24 = vld [vmem:[#allocation2 + $0x7b8] sm:$0xff] }
 0x22b   :  { %v4172_v26 = vcombine.high %v387_v19, %v391_v24  ;;  %v251_v28 = vld [vmem:[#allocation2 + $0x358] sm:$0xff] }
 0x22c   :  { %3715 = vmatpush1.bf16.msra.mxu0 %v3963_v47  ;;  %v4171_v47 = vcombine.low %v387_v19, %v391_v24  ;;  %v371_v53 = vld [vmem:[#allocation2 + $0x718] sm:$0xff]  ;;  %v4035_v56 = vcombine.low %v251_v28, %v255_v33 }
 0x22d   :  { %3756 = vmatpush1.bf16.msra.mxu1 %v4091_v50  ;;  %3716 = vmatprep.subr.bf16.mxu0 %v3956_v51  ;;  %v4036_v50 = vcombine.high %v251_v28, %v255_v33  ;;  %v4164_v51 = vcombine.high %v379_v34, %v383_v45  ;;  %v375_v54 = vld [vmem:[#allocation2 + $0x738] sm:$0xff] }
 0x22e   :  { %3757 = vmatprep.subr.bf16.mxu1 %v4084_v52  ;;  %v243_v52 = vld [vmem:[#allocation2 + $0x318] sm:$0xff] }
 0x22f   :  { %v239_v62 = vld [vmem:[#allocation2 + $0x2f8] sm:$0xff]  ;;  %v4027_v1 = vcombine.low %v243_v52, %v247_v43 }
 0x230   :  { %3717 = vmatpush1.bf16.msra.mxu0 %v3955_v58  ;;  %v4163_v58 = vcombine.low %v379_v34, %v383_v45  ;;  %v363_v63 = vld [vmem:[#allocation2 + $0x6d8] sm:$0xff] }
 0x231   :  { %3758 = vmatpush1.bf16.msra.mxu1 %v4083_v55  ;;  %3718 = vmatprep.subr.bf16.mxu0 %v3948_v8  ;;  %v4028_v55 = vcombine.high %v243_v52, %v247_v43  ;;  %v4156_v8 = vcombine.high %v371_v53, %v375_v54  ;;  %v367_v0 = vld [vmem:[#allocation2 + $0x6f8] sm:$0xff] }
 0x232   :  { %3759 = vmatprep.subr.bf16.mxu1 %v4076_v61  ;;  %v235_v61 = vld [vmem:[#allocation2 + $0x2d8] sm:$0xff] }
 0x233   :  { %v231_v4 = vld [vmem:[#allocation2 + $0x2b8] sm:$0xff]  ;;  %v4019_v7 = vcombine.low %v235_v61, %v239_v62 }
 0x234   :  { %3719 = vmatpush1.bf16.msra.mxu0 %v3947_v11  ;;  %v4155_v11 = vcombine.low %v371_v53, %v375_v54  ;;  %v355_v5 = vld [vmem:[#allocation2 + $0x698] sm:$0xff] }
 0x235   :  { %3760 = vmatpush1.bf16.msra.mxu1 %v4075_v2  ;;  %3720 = vmatprep.subr.bf16.mxu0 %v3940_v9  ;;  %v4020_v2 = vcombine.high %v235_v61, %v239_v62  ;;  %v4148_v9 = vcombine.high %v363_v63, %v367_v0  ;;  %v359_v6 = vld [vmem:[#allocation2 + $0x6b8] sm:$0xff] }
 0x236   :  { %3761 = vmatprep.subr.bf16.mxu1 %v4068_v3  ;;  %v227_v3 = vld [vmem:[#allocation2 + $0x298] sm:$0xff] }
 0x237   :  { %v223_v18 = vld [vmem:[#allocation2 + $0x278] sm:$0xff]  ;;  %v4011_v27 = vcombine.low %v227_v3, %v231_v4 }
 0x238   :  { %3721 = vmatpush1.bf16.msra.mxu0 %v3939_v13  ;;  %v4147_v13 = vcombine.low %v363_v63, %v367_v0  ;;  %v347_v22 = vld [vmem:[#allocation2 + $0x658] sm:$0xff] }
 0x239   :  { %3762 = vmatpush1.bf16.msra.mxu1 %v4067_v15  ;;  %3722 = vmatprep.subr.bf16.mxu0 %v3932_v29  ;;  %v4012_v15 = vcombine.high %v227_v3, %v231_v4  ;;  %v4140_v29 = vcombine.high %v355_v5, %v359_v6  ;;  %v351_v23 = vld [vmem:[#allocation2 + $0x678] sm:$0xff] }
 0x23a   :  { %3763 = vmatprep.subr.bf16.mxu1 %v4060_v16  ;;  %v219_v16 = vld [vmem:[#allocation2 + $0x258] sm:$0xff] }
 0x23b   :  { %v215_v42 = vld [vmem:[#allocation2 + $0x238] sm:$0xff]  ;;  %v4003_v24 = vcombine.low %v219_v16, %v223_v18 }
 0x23c   :  { %3723 = vmatpush1.bf16.msra.mxu0 %v3931_v30  ;;  %v4139_v30 = vcombine.low %v355_v5, %v359_v6  ;;  %v339_v44 = vld [vmem:[#allocation2 + $0x618] sm:$0xff] }
 0x23d   :  { %3764 = vmatpush1.bf16.msra.mxu1 %v4059_v36  ;;  %3724 = vmatprep.subr.bf16.mxu0 %v4052_v37  ;;  %v4004_v36 = vcombine.high %v219_v16, %v223_v18  ;;  %v4132_v37 = vcombine.high %v347_v22, %v351_v23  ;;  %v343_v19 = vld [vmem:[#allocation2 + $0x638] sm:$0xff] }
 0x23e   :  { %3765 = vmatprep.subr.bf16.mxu1 %v4180_v41  ;;  %v211_v41 = vld [vmem:[#allocation2 + $0x218] sm:$0xff] }
 0x23f   :  { %v463_v28 = vld [vmem:[#allocation2 + $0x9f8] sm:$0xff]  ;;  %v3995_v45 = vcombine.low %v211_v41, %v215_v42 }
 0x240   :  { %3725 = vmatpush2.bf16.msra.mxu0 %v4051_v20  ;;  %v4131_v20 = vcombine.low %v347_v22, %v351_v23  ;;  %v587_v33 = vld [vmem:[#allocation2 + $0xdd8] sm:$0xff] }
 0x241   :  { %3766 = vmatpush2.bf16.msra.mxu1 %v4179_v35  ;;  %3726 = vmatprep.subr.bf16.mxu0 %v4044_v21  ;;  %v3996_v35 = vcombine.high %v211_v41, %v215_v42  ;;  %v4124_v21 = vcombine.high %v339_v44, %v343_v19  ;;  %v591_v34 = vld [vmem:[#allocation2 + $0xdf8] sm:$0xff] }
 0x242   :  { %3767 = vmatprep.subr.bf16.mxu1 %v4172_v26  ;;  %v459_v26 = vld [vmem:[#allocation2 + $0x9d8] sm:$0xff] }
 0x243   :  { %v455_v52 = vld [vmem:[#allocation2 + $0x9b8] sm:$0xff]  ;;  %v4243_v43 = vcombine.low %v459_v26, %v463_v28 }
 0x244   :  { %3727 = vmatpush2.bf16.msra.mxu0 %v4043_v46  ;;  %v4123_v46 = vcombine.low %v339_v44, %v343_v19  ;;  %v579_v53 = vld [vmem:[#allocation2 + $0xd98] sm:$0xff] }
 0x245   :  { %3768 = vmatpush2.bf16.msra.mxu1 %v4171_v47  ;;  %3728 = vmatprep.subr.bf16.mxu0 %v4036_v50  ;;  %v4244_v47 = vcombine.high %v459_v26, %v463_v28  ;;  %v4372_v50 = vcombine.high %v587_v33, %v591_v34  ;;  %v583_v54 = vld [vmem:[#allocation2 + $0xdb8] sm:$0xff] }
 0x246   :  { %3769 = vmatprep.subr.bf16.mxu1 %v4164_v51  ;;  %v451_v51 = vld [vmem:[#allocation2 + $0x998] sm:$0xff]  ;;  %v4364_v62 = vcombine.high %v579_v53, %v583_v54  ;;  %v4363_v3 = vcombine.low %v579_v53, %v583_v54 }
 0x247   :  { %v571_v63 = vld [vmem:[#allocation2 + $0xd58] sm:$0xff] }
 0x248   :  { %3729 = vmatpush2.bf16.msra.mxu0 %v4035_v56  ;;  %v4371_v56 = vcombine.low %v587_v33, %v591_v34  ;;  %v575_v0 = vld [vmem:[#allocation2 + $0xd78] sm:$0xff] }
 0x249   :  { %3770 = vmatpush2.bf16.msra.mxu1 %v4163_v58  ;;  %3730 = vmatprep.subr.bf16.mxu0 %v4028_v55  ;;  %v4236_v58 = vcombine.high %v451_v51, %v455_v52  ;;  %v443_v55 = vld [vmem:[#allocation2 + $0x958] sm:$0xff] }
 0x24a   :  { %3771 = vmatprep.subr.bf16.mxu1 %v4156_v8  ;;  %v447_v8 = vld [vmem:[#allocation2 + $0x978] sm:$0xff] }
 0x24b   :  { %v4228_v4 = vcombine.high %v443_v55, %v447_v8  ;;  %v4227_v22 = vcombine.low %v443_v55, %v447_v8  ;;  %v427_v41 = vld [vmem:[#allocation2 + $0x8d8] sm:$0xff] }
 0x24c   :  { %3731 = vmatpush2.bf16.msra.mxu0 %v4027_v1  ;;  %v431_v42 = vld [vmem:[#allocation2 + $0x8f8] sm:$0xff] }
 0x24d   :  { %3772 = vmatpush2.bf16.msra.mxu1 %v4155_v11  ;;  %3732 = vmatprep.subr.bf16.mxu0 %v4020_v2  ;;  %v4235_v2 = vcombine.low %v451_v51, %v455_v52  ;;  %v555_v44 = vld [vmem:[#allocation2 + $0xcd8] sm:$0xff]  ;;  %v4211_v33 = vcombine.low %v427_v41, %v431_v42 }
 0x24e   :  { %3773 = vmatprep.subr.bf16.mxu1 %v4148_v9  ;;  %v423_v26 = vld [vmem:[#allocation2 + $0x8b8] sm:$0xff] }
 0x24f   :  { %v551_v28 = vld [vmem:[#allocation2 + $0xcb8] sm:$0xff] }
 0x250   :  { %3733 = vmatpush2.bf16.msra.mxu0 %v4019_v7  ;;  %v4356_v7 = vcombine.high %v571_v63, %v575_v0  ;;  %v539_v51 = vld [vmem:[#allocation2 + $0xc58] sm:$0xff] }
 0x251   :  { %3774 = vmatpush2.bf16.msra.mxu1 %v4147_v13  ;;  %3734 = vmatprep.subr.bf16.mxu0 %v4012_v15  ;;  %v439_v13 = vld [vmem:[#allocation2 + $0x938] sm:$0xff] }
 0x252   :  { %3775 = vmatprep.subr.bf16.mxu1 %v4140_v29  ;;  %v567_v29 = vld [vmem:[#allocation2 + $0xd38] sm:$0xff] }
 0x253   :  { %v543_v52 = vld [vmem:[#allocation2 + $0xc78] sm:$0xff] }
 0x254   :  { %3735 = vmatpush2.bf16.msra.mxu0 %v4011_v27  ;;  %v407_v55 = vld [vmem:[#allocation2 + $0x838] sm:$0xff] }
 0x255   :  { %3776 = vmatpush2.bf16.msra.mxu1 %v4139_v30  ;;  %3736 = vmatprep.subr.bf16.mxu0 %v4004_v36  ;;  %v531_v8 = vld [vmem:[#allocation2 + $0xc18] sm:$0xff] }
 0x256   :  { %3777 = vmatprep.subr.bf16.mxu1 %v4132_v37 }
 0x258   :  { %3737 = vmatpush2.bf16.msra.mxu0 %v4003_v24 }
 0x259   :  { %3778 = vmatpush2.bf16.msra.mxu1 %v4131_v20  ;;  %3738 = vmatprep.subr.bf16.mxu0 %v3996_v35  ;;  %v4212_v35 = vcombine.high %v427_v41, %v431_v42  ;;  %v503_v41 = vld [vmem:[#allocation2 + $0xb38] sm:$0xff] }
 0x25a   :  { %3779 = vmatprep.subr.bf16.mxu1 %v4124_v21  ;;  %v627_v42 = vld [vmem:[#allocation2 + $0xf18] sm:$0xff] }
 0x25c   :  { %3739 = vmatpush2.bf16.msra.mxu0 %v3995_v45 }
 0x25d   :  { %3780 = vmatpush2.bf16.msra.mxu1 %v4123_v46  ;;  %3790 = vmatprep.subr.bf16.mxu0 %v4244_v47  ;;  %v411_v47 = vld [vmem:[#allocation2 + $0x858] sm:$0xff] }
 0x25e   :  { %3831 = vmatprep.subr.bf16.mxu1 %v4372_v50  ;;  %v415_v50 = vld [vmem:[#allocation2 + $0x878] sm:$0xff] }
 0x25f   :  { %v3496_v61 = vpop.f32.mrf.mxu0  ;;  %3741 = vmatmul.mubr.bf16.vlgmr.msra.gmra.mxu0 %v4665_v17  ;;  %v4196_v54 = vcombine.high %v411_v47, %v415_v50 }
 0x260   :  { %v3497_v1 = vadd.f32 %v3496_v61, %v4735_v59  ;;  %v3537_v11 = vpop.f32.mrf.mxu1  ;;  %3782 = vmatmul.mubr.bf16.vlgmr.msra.gmra.mxu1 %v4669_v40  ;;  %3791 = vmatpush1.bf16.msra.mxu0 %v4243_v43  ;;  %v435_v59 = vld [vmem:[#allocation2 + $0x918] sm:$0xff] }
 0x261   :  { %3822 = vmatprep.mubr.bf16.mxu0 %v4677_v31  ;;  %3832 = vmatpush1.bf16.msra.mxu1 %v4371_v56  ;;  %v3498_v9 = vpop.f32.mrf.mxu0  ;;  %v563_v40 = vld [vmem:[#allocation2 + $0xd18] sm:$0xff]  ;;  %v4219_v24 = vcombine.low %v435_v59, %v439_v13  ;;  %v4324_v56 = vcombine.high %v539_v51, %v543_v52 }
 0x262   :  { %v3538_v5 = vadd.f32 %v3537_v11, %v3497_v1  ;;  %3863 = vmatprep.mubr.bf16.mxu1 %v4681_v32  ;;  %v3499_v17 = vadd.f32 %v3498_v9, %v4739_v38  ;;  %v3539_v6 = vpop.f32.mrf.mxu1  ;;  %3792 = vmatprep.subr.bf16.mxu0 %v4236_v58  ;;  %v4355_v32 = vcombine.low %v571_v63, %v575_v0  ;;  %v403_v58 = vld [vmem:[#allocation2 + $0x818] sm:$0xff] }
 0x263   :  { %v3500_v15 = vpop.f32.mrf.mxu0  ;;  %3833 = vmatprep.subr.bf16.mxu1 %v4364_v62  ;;  %v4220_v38 = vcombine.high %v435_v59, %v439_v13  ;;  %v4348_v37 = vcombine.high %v563_v40, %v567_v29  ;;  %v4347_v20 = vcombine.low %v563_v40, %v567_v29  ;;  %v535_v61 = vld [vmem:[#allocation2 + $0xc38] sm:$0xff]  ;;  %v4195_v62 = vcombine.low %v411_v47, %v415_v50 }
 0x264   :  { %v3874_v31 = vmul.f32 %v3538_v5, %v4645_v12  ;;  %v3540_v16 = vadd.f32 %v3539_v6, %v3499_v17  ;;  %v3541_v18 = vpop.f32.mrf.mxu1  ;;  %3793 = vmatpush1.bf16.msra.mxu0 %v4235_v2  ;;  %v559_v12 = vld [vmem:[#allocation2 + $0xcf8] sm:$0xff]  ;;  %v4323_v63 = vcombine.low %v539_v51, %v543_v52  ;;  %v4188_v0 = vcombine.high %v403_v58, %v407_v55 }
 0x265   :  { %3834 = vmatpush1.bf16.msra.mxu1 %v4363_v3  ;;  %v3501_v23 = vpop.f32.mrf.mxu0  ;;  %3794 = vmatprep.subr.bf16.mxu0 %v4228_v4  ;;  %v4340_v21 = vcombine.high %v555_v44, %v559_v12  ;;  %v4339_v34 = vcombine.low %v555_v44, %v559_v12  ;;  %v4316_v1 = vcombine.high %v531_v8, %v535_v61  ;;  %v523_v11 = vld [vmem:[#allocation2 + $0xbd8] sm:$0xff] }
 0x266   :  { %v3881_v27 = vadd.f32 %v4731_v60, %v3874_v31  ;;  %v3875_v30 = vmul.f32 %v3540_v16, %v4637_v10  ;;  %v3542_v36 = vpop.f32.mrf.mxu1  ;;  %3835 = vmatprep.subr.bf16.mxu1 %v4356_v7  ;;  %v419_v60 = vld [vmem:[#allocation2 + $0x898] sm:$0xff]  ;;  %v4187_v4 = vcombine.low %v403_v58, %v407_v55  ;;  %v4315_v5 = vcombine.low %v531_v8, %v535_v61 }
 0x267   :  { %v547_v10 = vld [vmem:[#allocation2 + $0xc98] sm:$0xff]  ;;  %v4204_v45 = vcombine.high %v419_v60, %v423_v26  ;;  %v4203_v43 = vcombine.low %v419_v60, %v423_v26 }
 0x268   :  { %v4750_v19 = vadd.f32 %v3881_v27, %v3875_v30  ;;  %3795 = vmatpush1.bf16.msra.mxu0 %v4227_v22  ;;  %v4332_v46 = vcombine.high %v547_v10, %v551_v28  ;;  %v4331_v53 = vcombine.low %v547_v10, %v551_v28  ;;  %v527_v2 = vld [vmem:[#allocation2 + $0xbf8] sm:$0xff] }
 0x269   :  { %3836 = vmatpush1.bf16.msra.mxu1 %v4355_v32  ;;  %3796 = vmatprep.subr.bf16.mxu0 %v4220_v38  ;;  %v651_v9 = vld [vmem:[#allocation2 + $0xfd8] sm:$0xff]  ;;  %v4308_v17 = vcombine.high %v523_v11, %v527_v2  ;;  %v4307_v40 = vcombine.low %v523_v11, %v527_v2 }
 0x26a   :  { %3837 = vmatprep.subr.bf16.mxu1 %v4348_v37  ;;  %v655_v3 = vld [vmem:[#allocation2 + $0xff8] sm:$0xff] }
 0x26b   :  { %v4436_v6 = vcombine.high %v651_v9, %v655_v3  ;;  %v515_v7 = vld [vmem:[#allocation2 + $0xb98] sm:$0xff]  ;;  %v4435_v29 = vcombine.low %v651_v9, %v655_v3 }
 0x26c   :  { %3797 = vmatpush1.bf16.msra.mxu0 %v4219_v24  ;;  %v519_v59 = vld [vmem:[#allocation2 + $0xbb8] sm:$0xff] }
 0x26d   :  { %3838 = vmatpush1.bf16.msra.mxu1 %v4347_v20  ;;  %3798 = vmatprep.subr.bf16.mxu0 %v4212_v35  ;;  %v643_v13 = vld [vmem:[#allocation2 + $0xf98] sm:$0xff]  ;;  %v4300_v31 = vcombine.high %v515_v7, %v519_v59  ;;  %v4299_v38 = vcombine.low %v515_v7, %v519_v59 }
 0x26e   :  { %3839 = vmatprep.subr.bf16.mxu1 %v4340_v21  ;;  %v647_v15 = vld [vmem:[#allocation2 + $0xfb8] sm:$0xff] }
 0x26f   :  { %v4428_v16 = vcombine.high %v643_v13, %v647_v15  ;;  %v507_v18 = vld [vmem:[#allocation2 + $0xb58] sm:$0xff]  ;;  %v4427_v27 = vcombine.low %v643_v13, %v647_v15 }
 0x270   :  { %3799 = vmatpush1.bf16.msra.mxu0 %v4211_v33  ;;  %v511_v22 = vld [vmem:[#allocation2 + $0xb78] sm:$0xff] }
 0x271   :  { %3840 = vmatpush1.bf16.msra.mxu1 %v4339_v34  ;;  %3800 = vmatprep.subr.bf16.mxu0 %v4204_v45  ;;  %v635_v23 = vld [vmem:[#allocation2 + $0xf58] sm:$0xff]  ;;  %v4292_v30 = vcombine.high %v507_v18, %v511_v22  ;;  %v4291_v12 = vcombine.low %v507_v18, %v511_v22 }
 0x272   :  { %3841 = vmatprep.subr.bf16.mxu1 %v4332_v46  ;;  %v639_v32 = vld [vmem:[#allocation2 + $0xf78] sm:$0xff] }
 0x273   :  { %v4420_v36 = vcombine.high %v635_v23, %v639_v32  ;;  %v499_v37 = vld [vmem:[#allocation2 + $0xb18] sm:$0xff]  ;;  %v4419_v24 = vcombine.low %v635_v23, %v639_v32 }
 0x274   :  { %3801 = vmatpush1.bf16.msra.mxu0 %v4203_v43  ;;  %v631_v44 = vld [vmem:[#allocation2 + $0xf38] sm:$0xff]  ;;  %v4284_v20 = vcombine.high %v499_v37, %v503_v41  ;;  %v4283_v28 = vcombine.low %v499_v37, %v503_v41 }
 0x275   :  { %3842 = vmatpush1.bf16.msra.mxu1 %v4331_v53  ;;  %3802 = vmatprep.subr.bf16.mxu0 %v4196_v54  ;;  %v4412_v35 = vcombine.high %v627_v42, %v631_v44  ;;  %v491_v21 = vld [vmem:[#allocation2 + $0xad8] sm:$0xff]  ;;  %v4411_v33 = vcombine.low %v627_v42, %v631_v44 }
 0x276   :  { %3843 = vmatprep.subr.bf16.mxu1 %v4324_v56  ;;  %v495_v60 = vld [vmem:[#allocation2 + $0xaf8] sm:$0xff] }
 0x277   :  { %v619_v26 = vld [vmem:[#allocation2 + $0xed8] sm:$0xff]  ;;  %v4276_v34 = vcombine.high %v491_v21, %v495_v60  ;;  %v4275_v52 = vcombine.low %v491_v21, %v495_v60 }
 0x278   :  { %3803 = vmatpush1.bf16.msra.mxu0 %v4195_v62  ;;  %v623_v10 = vld [vmem:[#allocation2 + $0xef8] sm:$0xff] }
 0x279   :  { %3844 = vmatpush1.bf16.msra.mxu1 %v4323_v63  ;;  %3804 = vmatprep.subr.bf16.mxu0 %v4188_v0  ;;  %v4404_v45 = vcombine.high %v619_v26, %v623_v10  ;;  %v483_v46 = vld [vmem:[#allocation2 + $0xa98] sm:$0xff]  ;;  %v4403_v43 = vcombine.low %v619_v26, %v623_v10 }
 0x27a   :  { %3845 = vmatprep.subr.bf16.mxu1 %v4316_v1  ;;  %v487_v47 = vld [vmem:[#allocation2 + $0xab8] sm:$0xff] }
 0x27b   :  { %v611_v50 = vld [vmem:[#allocation2 + $0xe98] sm:$0xff]  ;;  %v4268_v53 = vcombine.high %v483_v46, %v487_v47  ;;  %v4267_v61 = vcombine.low %v483_v46, %v487_v47 }
 0x27c   :  { %3805 = vmatpush1.bf16.msra.mxu0 %v4187_v4  ;;  %v615_v51 = vld [vmem:[#allocation2 + $0xeb8] sm:$0xff] }
 0x27d   :  { %3846 = vmatpush1.bf16.msra.mxu1 %v4315_v5  ;;  %3806 = vmatprep.subr.bf16.mxu0 %v4308_v17  ;;  %v4396_v54 = vcombine.high %v611_v50, %v615_v51  ;;  %v475_v56 = vld [vmem:[#allocation2 + $0xa58] sm:$0xff]  ;;  %v4395_v62 = vcombine.low %v611_v50, %v615_v51 }
 0x27e   :  { %3847 = vmatprep.subr.bf16.mxu1 %v4436_v6  ;;  %v479_v58 = vld [vmem:[#allocation2 + $0xa78] sm:$0xff] }
 0x27f   :  { %v603_v55 = vld [vmem:[#allocation2 + $0xe58] sm:$0xff]  ;;  %v4260_v63 = vcombine.high %v475_v56, %v479_v58  ;;  %v4259_v3 = vcombine.low %v475_v56, %v479_v58 }
 0x280   :  { %3807 = vmatpush2.bf16.msra.mxu0 %v4307_v40  ;;  %v607_v8 = vld [vmem:[#allocation2 + $0xe78] sm:$0xff] }
 0x281   :  { %3848 = vmatpush2.bf16.msra.mxu1 %v4435_v29  ;;  %3808 = vmatprep.subr.bf16.mxu0 %v4300_v31  ;;  %v4388_v0 = vcombine.high %v603_v55, %v607_v8  ;;  %v467_v1 = vld [vmem:[#allocation2 + $0xa18] sm:$0xff]  ;;  %v4387_v4 = vcombine.low %v603_v55, %v607_v8 }
 0x282   :  { %3849 = vmatprep.subr.bf16.mxu1 %v4428_v16  ;;  %v471_v11 = vld [vmem:[#allocation2 + $0xa38] sm:$0xff] }
 0x283   :  { %v595_v2 = vld [vmem:[#allocation2 + $0xe18] sm:$0xff]  ;;  %v4252_v5 = vcombine.high %v467_v1, %v471_v11  ;;  %v4251_v6 = vcombine.low %v467_v1, %v471_v11  ;;  %v4437_v1 = vld [vmem:[#allocation4] ss:$0 sm:$0xff] }
 0x284   :  { %3809 = vmatpush2.bf16.msra.mxu0 %v4299_v38  ;;  %v599_v9 = vld [vmem:[#allocation2 + $0xe38] sm:$0xff] }
 0x285   :  { %3850 = vmatpush2.bf16.msra.mxu1 %v4427_v27  ;;  %3810 = vmatprep.subr.bf16.mxu0 %v4292_v30  ;;  %v4380_v17 = vcombine.high %v595_v2, %v599_v9  ;;  %v4379_v7 = vcombine.low %v595_v2, %v599_v9  ;;  %v4438_v2 = vld [vmem:[#allocation6] ss:$0 sm:$0xff] }
 0x286   :  { %3851 = vmatprep.subr.bf16.mxu1 %v4420_v36 }
 0x288   :  { %3811 = vmatpush2.bf16.msra.mxu0 %v4291_v12 }
 0x289   :  { %3852 = vmatpush2.bf16.msra.mxu1 %v4419_v24  ;;  %3812 = vmatprep.subr.bf16.mxu0 %v4284_v20 }
 0x28a   :  { %3853 = vmatprep.subr.bf16.mxu1 %v4412_v35 }
 0x28c   :  { %3813 = vmatpush2.bf16.msra.mxu0 %v4283_v28 }
 0x28d   :  { %3854 = vmatpush2.bf16.msra.mxu1 %v4411_v33  ;;  %3814 = vmatprep.subr.bf16.mxu0 %v4276_v34 }
 0x28e   :  { %3855 = vmatprep.subr.bf16.mxu1 %v4404_v45 }
 0x290   :  { %3815 = vmatpush2.bf16.msra.mxu0 %v4275_v52 }
 0x291   :  { %3856 = vmatpush2.bf16.msra.mxu1 %v4403_v43  ;;  %3816 = vmatprep.subr.bf16.mxu0 %v4268_v53 }
 0x292   :  { %3857 = vmatprep.subr.bf16.mxu1 %v4396_v54 }
 0x294   :  { %3817 = vmatpush2.bf16.msra.mxu0 %v4267_v61 }
 0x295   :  { %3858 = vmatpush2.bf16.msra.mxu1 %v4395_v62  ;;  %3818 = vmatprep.subr.bf16.mxu0 %v4260_v63 }
 0x296   :  { %3859 = vmatprep.subr.bf16.mxu1 %v4388_v0 }
 0x298   :  { %3819 = vmatpush2.bf16.msra.mxu0 %v4259_v3 }
 0x299   :  { %3860 = vmatpush2.bf16.msra.mxu1 %v4387_v4  ;;  %3820 = vmatprep.subr.bf16.mxu0 %v4252_v5 }
 0x29a   :  { %3861 = vmatprep.subr.bf16.mxu1 %v4380_v17 }
 0x29c   :  { %3821 = vmatpush2.bf16.msra.mxu0 %v4251_v6 }
 0x29d   :  { %3862 = vmatpush2.bf16.msra.mxu1 %v4379_v7 }
 0x29f   :  { %v3578_v59 = vpop.f32.mrf.mxu0  ;;  %3823 = vmatmul.mubr.bf16.vlgmr.msra.gmra.mxu0 %v4701_v57 }
 0x2a0   :  { %v3619_v13 = vpop.f32.mrf.mxu1  ;;  %3864 = vmatmul.mubr.bf16.vlgmr.msra.gmra.mxu1 %v4705_v39 }
 0x2a1   :  { %v3620_v15 = vadd.f32 %v3619_v13, %v3578_v59  ;;  %v3580_v40 = vpop.f32.mrf.mxu0 }
 0x2a2   :  { %v3621_v29 = vpop.f32.mrf.mxu1 }
 0x2a3   :  { %v3622_v31 = vadd.f32 %v3621_v29, %v3580_v40  ;;  %v3582_v16 = vpop.f32.mrf.mxu0 }
 0x2a4   :  { %v3623_v18 = vpop.f32.mrf.mxu1 }
 0x2a5   :  { %v3583_v22 = vpop.f32.mrf.mxu0 }
 0x2a6   :  { %v3624_v23 = vpop.f32.mrf.mxu1 }
 0x2df   :  { %v3660_v32 = vpop.f32.mrf.mxu0 }
 0x2e0   :  { %v3661_v38 = vadd.f32 %v3660_v32, %v3620_v15  ;;  %v3701_v27 = vpop.f32.mrf.mxu1 }
 0x2e1   :  { %v3662_v30 = vpop.f32.mrf.mxu0 }
 0x2e2   :  { %v3702_v36 = vadd.f32 %v3701_v27, %v3661_v38  ;;  %v3663_v37 = vadd.f32 %v3662_v30, %v3622_v31  ;;  %v3703_v41 = vpop.f32.mrf.mxu1 }
 0x2e3   :  { %v3664_v42 = vpop.f32.mrf.mxu0 }
 0x2e4   :  { %v3876_v57 = vmul.f32 %v3702_v36, %v4693_v48  ;;  %v3704_v44 = vadd.f32 %v3703_v41, %v3663_v37  ;;  %v3705_v39 = vpop.f32.mrf.mxu1 }
 0x2e5   :  { %v3665_v12 = vpop.f32.mrf.mxu0 }
 0x2e6   :  { %v3883_v24 = vadd.f32 %v4750_v19, %v3876_v57  ;;  %v3877_v20 = vmul.f32 %v3704_v44, %v4649_v14  ;;  %v3706_v35 = vpop.f32.mrf.mxu1 }
 0x2e8   :  { %v3884_v21 = vadd.f32 %v3883_v24, %v3877_v20 }
 0x31f   :  { %v3742_v60 = vpop.f32.mrf.mxu0 }
 0x320   :  { %v3783_v26 = vpop.f32.mrf.mxu1 }
 0x321   :  { %v3744_v10 = vpop.f32.mrf.mxu0  ;;  %v3784_v47 = vadd.f32 %v3783_v26, %v3742_v60 }
 0x322   :  { %v3785_v28 = vpop.f32.mrf.mxu1 }
 0x323   :  { %v3746_v33 = vpop.f32.mrf.mxu0  ;;  %v3786_v48 = vadd.f32 %v3785_v28, %v3744_v10 }
 0x324   :  { %v3787_v34 = vpop.f32.mrf.mxu1 }
 0x325   :  { %v3747_v45 = vpop.f32.mrf.mxu0 }
 0x326   :  { %v3788_v46 = vpop.f32.mrf.mxu1 }
 0x35f   :  { %v3824_v50 = vpop.f32.mrf.mxu0 }
 0x360   :  { %v3825_v51 = vadd.f32 %v3824_v50, %v3784_v47  ;;  %v3865_v52 = vpop.f32.mrf.mxu1 }
 0x361   :  { %v3826_v43 = vpop.f32.mrf.mxu0 }
 0x362   :  { %v3866_v53 = vadd.f32 %v3865_v52, %v3825_v51  ;;  %v3827_v19 = vadd.f32 %v3826_v43, %v3786_v48  ;;  %v3867_v54 = vpop.f32.mrf.mxu1 }
 0x363   :  { %v3828_v14 = vpop.f32.mrf.mxu0 }
 0x364   :  { %v3878_v56 = vmul.f32 %v3866_v53, %v4697_v49  ;;  %v3868_v58 = vadd.f32 %v3867_v54, %v3827_v19  ;;  %v3869_v55 = vpop.f32.mrf.mxu1 }
 0x365   :  { %v3829_v8 = vpop.f32.mrf.mxu0 }
 0x366   :  { %v3879_v61 = vmul.f32 %v3868_v58, %v4653_v25  ;;  %v3870_v62 = vpop.f32.mrf.mxu1  ;;  %v3885_v63 = vadd.f32 %v3884_v21, %v3878_v56 }
 0x368   :  { %v3886_v0 = vadd.f32 %v3885_v63, %v3879_v61 }
 0x36a   :  { %3887 = vadd.xlane.f32.xlu0 %v3886_v0 }
 0x3f3   :  { %v3888_v11 = vpop.xlane.xlu0 %3887 }
 0x3f4   :  { %v3896_v9 = vmul.f32 %v4437_v1, %v3888_v11 }
 0x3f6   :  { %v3904_v3 = vadd.f32 %v4438_v2, %v3896_v9 }
 0x3f8   :  { %v3906_v4 = vsel %vm3905_vm8, %v3904_v3, -inf }
 0x3f9   :  { %3907 = vmax.xlane.f32.xlu1 %v3906_v4 }
 0x482   :  { %v3908_v5 = vpop.xlane.xlu1 %3907 }
 0x483   :  { %v3909_v49 = vsub.f32 %v3904_v3, %v3908_v5 }
 0x485   :  { %v3910_v17 = vmul.f32 1.442695, %v3909_v49 }
 0x487   :  { %4446 = vpow2.f32 %v3910_v17 }
 0x494   :  { %v4447_v6 = vpop.eup %4446 }
 0x495   :  { %v3912_v25 = vsel %vm3905_vm8, %v4447_v6, 0.0 }
 0x496   :  { %3913 = vadd.xlane.f32.xlu1 %v3912_v25 }
 0x51f   :  { %v3914_v7 = vpop.xlane.xlu1 %3913 }
 0x520   :  { %4448 = vlog2.f32 %v3914_v7 }
 0x52d   :  { %v4449_v59 = vpop.eup %4448 }
 0x52e   :  { %v3916_v13 = vmul.f32 0.6931472, %v4449_v59 }
 0x530   :  { %v3917_v15 = vsub.f32 %v3909_v49, %v3916_v13 }
 0x532   :  { %3918 = vst.msk [vmem:[%s4769_s4] sm:$0xff] %vm3905_vm8, %v3917_v15 }
 0x533   :  { %3923 = vsyncpa [#allocation3], 1 }
 0x534   :  { %3924 = vsyncpa [#allocation5], 1 }

</bundles_post_ra>
